<compile_context>
chip_gen: v5e
topology: v5e:2x2
jax: 0.10.0
libtpu: 0.0.40
codegen_flags: <defaults>
</compile_context>

<pallas_src>
import functools

import jax
import jax.numpy as jnp
from jax.experimental import pallas as pl
from jax.experimental.pallas import tpu as pltpu


# ---------------------------------------------------------------------------
# Small helpers.
# ---------------------------------------------------------------------------
def _round_up(n, m):
    return ((n + m - 1) // m) * m


def _pick_tile(dim, candidates):
    """Largest candidate tile that divides `dim` (dim is a multiple of 256)."""
    for c in candidates:
        if dim % c == 0:
            return c
    return 128


def _pad_dim(n, align=256, grow_to=512, max_waste=0.125):
    """Pad to MXU-aligned multiple of 256; grow to a 512 multiple only when the
    extra padding is small (<= 12.5%), so bigger tm tiles come for free."""
    p = _round_up(n, align)
    g = _round_up(p, grow_to)
    if g > p and (g - p) <= p * max_waste:
        p = g
    return p


def _vmem_budget_bytes():
    """~3/4 of this chip's VMEM (128 MiB on v5e/v6e, 64 MiB on v7x)."""
    cap = 64 * 1024 * 1024
    try:
        info = pltpu.get_tpu_info()
        cap = int(getattr(info, "vmem_capacity_bytes", cap))
    except Exception:
        pass
    return max(32 * 1024 * 1024, min((cap * 3) // 4, 110 * 1024 * 1024))


# ---------------------------------------------------------------------------
# Pallas kernel: one LightGCN hop, fused with the stack accumulation.
#   X_new = A @ X          (scatter-mean as a normalized-adjacency matmul)
#   F_out = F_in + X_new * inv
# Grid = (M/tm, K/tk); reduction axis (k) is last and "arbitrary".
# Partial products accumulate directly into the VMEM-resident x_new output
# block (or a VMEM scratch when x_new is not emitted on the last hop).
# ---------------------------------------------------------------------------
def _hop_kernel(a_ref, x_ref, f_ref, *rest, inv, tk, x_resident, emit_xnew):
    if emit_xnew:
        xnew_ref, fout_ref = rest
        acc_ref = xnew_ref          # accumulate directly into the f32 output
    else:
        fout_ref, acc_ref = rest    # acc_ref is a VMEM f32 scratch

    k = pl.program_id(1)

    @pl.when(k == 0)
    def _():
        acc_ref[...] = jnp.zeros_like(acc_ref)

    a = a_ref[...]
    if x_resident:
        off = pl.multiple_of(k * tk, tk)
        x = x_ref[pl.ds(off, tk), :]
    else:
        x = x_ref[...]
    # MXU in the (bf16 / f32) input dtype, f32 accumulation.
    acc_ref[...] += jnp.dot(a, x, preferred_element_type=jnp.float32)

    @pl.when(k == pl.num_programs(1) - 1)
    def _():
        fout_ref[...] = f_ref[...] + acc_ref[...] * inv


def _hop(a, x, f, inv, *, tm, tk, vmem_budget, emit_xnew=True,
         force_stream_x=False):
    """One tiled hop.  Returns (x_new, f_out) or just f_out (emit_xnew=False)."""
    M, K = a.shape
    Dp = x.shape[1]
    grid = (M // tm, K // tk)

    itm_a = jnp.dtype(a.dtype).itemsize
    itm_x = jnp.dtype(x.dtype).itemsize
    tile_f32 = tm * Dp * 4

    # Double-buffered working-set estimate -> decide whether X fits resident.
    base = 2 * tm * tk * itm_a                      # A tiles
    base += 2 * tile_f32                            # F_in tiles
    base += 2 * tile_f32 * (2 if emit_xnew else 1)  # output tiles
    if not emit_xnew:
        base += tile_f32                            # f32 scratch accumulator
    x_resident = (not force_stream_x) and (base + 2 * K * Dp * itm_x
                                           <= vmem_budget)

    if x_resident:
        x_spec = pl.BlockSpec((K, Dp), lambda i, k: (0, 0))   # DMA'd once
    else:
        x_spec = pl.BlockSpec((tk, Dp), lambda i, k: (k, 0))  # streamed per k

    in_specs = [
        pl.BlockSpec((tm, tk), lambda i, k: (i, k)),   # A tile
        x_spec,                                        # X
        pl.BlockSpec((tm, Dp), lambda i, k: (i, 0)),   # F_in tile (per-row)
    ]
    out_block = pl.BlockSpec((tm, Dp), lambda i, k: (i, 0))
    if emit_xnew:
        out_shape = (jax.ShapeDtypeStruct((M, Dp), jnp.float32),   # x_new
                     jax.ShapeDtypeStruct((M, Dp), jnp.float32))   # f_out
        out_specs = [out_block, out_block]
        scratch = []
        aliases = {2: 1}   # F_in buffer reused for F_out
    else:
        out_shape = jax.ShapeDtypeStruct((M, Dp), jnp.float32)     # f_out only
        out_specs = out_block
        scratch = [pltpu.VMEM((tm, Dp), jnp.float32)]
        aliases = {2: 0}

    flops = 2 * M * K * Dp + 2 * M * Dp
    bytes_accessed = (itm_a * M * K
                      + itm_x * K * Dp * (1 if x_resident else grid[0])
                      + 4 * M * Dp * (3 if emit_xnew else 2))

    kernel = functools.partial(_hop_kernel, inv=float(inv), tk=tk,
                               x_resident=x_resident, emit_xnew=emit_xnew)
    return pl.pallas_call(
        kernel,
        out_shape=out_shape,
        grid_spec=pltpu.PrefetchScalarGridSpec(
            num_scalar_prefetch=0,
            grid=grid,
            in_specs=in_specs,
            out_specs=out_specs,
            scratch_shapes=scratch,
        ),
        compiler_params=pltpu.CompilerParams(
            dimension_semantics=("parallel", "arbitrary"),
            vmem_limit_bytes=int(vmem_budget),
        ),
        cost_estimate=pl.CostEstimate(flops=flops, transcendentals=0,
                                      bytes_accessed=bytes_accessed),
        input_output_aliases=aliases,
    )(a, x, f)


# ---------------------------------------------------------------------------
# Full LightGCNStack forward.
# ---------------------------------------------------------------------------
def lightgcn_stack_forward(a2u_norm, u2a_norm, x_users, x_artists, num_layers,
                           *, adj_dtype=jnp.bfloat16, force_stream_x=False):
    U, A = a2u_norm.shape
    D = x_users.shape[1]
    inv = 1.0 / (num_layers + 1)
    adj_dtype = jnp.dtype(adj_dtype)

    # Pad node dims (MXU-aligned, grown to 512-multiples only if cheap) and the
    # latent dim to a multiple of 128 (lane-dense output stores).
    Dp = _round_up(D, 128)
    Up = _pad_dim(U)
    Ap = _pad_dim(A)
    tm_u = _pick_tile(Up, (512, 256))
    tm_a = _pick_tile(Ap, (512, 256))
    tk_u = _pick_tile(Up, (1024, 512, 256))
    tk_a = _pick_tile(Ap, (1024, 512, 256))

    vmem_budget = _vmem_budget_bytes()

    a2u_p = jnp.zeros((Up, Ap), adj_dtype).at[:U, :A].set(
        a2u_norm.astype(adj_dtype))
    u2a_p = jnp.zeros((Ap, Up), adj_dtype).at[:A, :U].set(
        u2a_norm.astype(adj_dtype))
    xu = jnp.zeros((Up, Dp), jnp.float32).at[:U, :D].set(x_users)
    xa = jnp.zeros((Ap, Dp), jnp.float32).at[:A, :D].set(x_artists)

    fu = xu * inv
    fa = xa * inv
    xa_in = xa.astype(adj_dtype)
    for layer in range(num_layers):
        # x_users <- scatter_mean over (artist -> user) edges of x_artists
        xu_new, fu = _hop(a2u_p, xa_in, fu, inv, tm=tm_u, tk=tk_a,
                          vmem_budget=vmem_budget, emit_xnew=True,
                          force_stream_x=force_stream_x)
        xu_in = xu_new.astype(adj_dtype)
        # x_artists <- scatter_mean over (user -> artist) edges of NEW x_users
        if layer == num_layers - 1:
            # Final hop: x_artists is never consumed again -> skip x_new write.
            fa = _hop(u2a_p, xu_in, fa, inv, tm=tm_a, tk=tk_u,
                      vmem_budget=vmem_budget, emit_xnew=False,
                      force_stream_x=force_stream_x)
        else:
            xa_new, fa = _hop(u2a_p, xu_in, fa, inv, tm=tm_a, tk=tk_u,
                              vmem_budget=vmem_budget, emit_xnew=True,
                              force_stream_x=force_stream_x)
            xa_in = xa_new.astype(adj_dtype)

    return fu[:U, :D], fa[:A, :D]


lightgcn_stack = jax.jit(
    lightgcn_stack_forward,
    static_argnames=("num_layers", "adj_dtype", "force_stream_x"))


# ---------------------------------------------------------------------------
# Glue: build the normalized adjacency (scatter-mean operator) from edges.
# ---------------------------------------------------------------------------
def build_mean_adjacency(src_ids, dst_ids, num_src, num_dst):
    """A [num_dst, num_src] with A[t, s] = count(s->t) / in_deg(t)."""
    counts = jnp.zeros((num_dst, num_src), dtype=jnp.float32)
    counts = counts.at[dst_ids, src_ids].add(1.0)
    deg = counts.sum(axis=1, keepdims=True)
    return counts / jnp.maximum(deg, 1.0)   # isolated targets stay all-zero


# ---------------------------------------------------------------------------
# Pure-JAX reference (mirrors the PyTorch forward exactly, f32 throughout).
# ---------------------------------------------------------------------------
def reference_forward(a2u, u2a, x_users, x_artists, num_layers):
    inv = 1.0 / (num_layers + 1)
    fu = x_users * inv
    fa = x_artists * inv
    xu, xa = x_users, x_artists
    for _ in range(num_layers):
        xu = a2u @ xa
        xa = u2a @ xu
        fu = fu + xu * inv
        fa = fa + xa * inv
    return fu, fa


if __name__ == "__main__":
    key = jax.random.PRNGKey(0)
    k_eu, k_ea, k_sa, k_da, k_su, k_du = jax.random.split(key, 6)

    NUM_USERS = 16
    NUM_ARTISTS = 32
    LATENT_DIM = 128
    NUM_LAYERS = 2
    NUM_EDGES = 64

    # Deterministic "Embedding.weight" initializations.
    x_users = jax.random.normal(k_eu, (NUM_USERS, LATENT_DIM), dtype=jnp.float32)
    x_artists = jax.random.normal(k_ea, (NUM_ARTISTS, LATENT_DIM), dtype=jnp.float32)

    # edge_index_a2u: row0 = artist (source), row1 = user (target)
    a2u_src = jax.random.randint(k_sa, (NUM_EDGES,), 0, NUM_ARTISTS)
    a2u_dst = jax.random.randint(k_da, (NUM_EDGES,), 0, NUM_USERS)
    # edge_index_u2a: row0 = user (source), row1 = artist (target)
    u2a_src = jax.random.randint(k_su, (NUM_EDGES,), 0, NUM_USERS)
    u2a_dst = jax.random.randint(k_du, (NUM_EDGES,), 0, NUM_ARTISTS)

    a2u_norm = build_mean_adjacency(a2u_src, a2u_dst, NUM_ARTISTS, NUM_USERS)  # [U, A]
    u2a_norm = build_mean_adjacency(u2a_src, u2a_dst, NUM_USERS, NUM_ARTISTS)  # [A, U]

    ref_fu, ref_fa = reference_forward(a2u_norm, u2a_norm,
                                       x_users, x_artists, NUM_LAYERS)

    # 1) Default fast path: bf16 adjacency + features, X held VMEM-resident.
    #    (bf16 trade-off => looser tolerance, documented in the perf review.)
    fu, fa = lightgcn_stack(a2u_norm, u2a_norm, x_users, x_artists,
                            num_layers=NUM_LAYERS)
    fu, fa = jax.block_until_ready((fu, fa))
    assert fu.shape == ref_fu.shape and fa.shape == ref_fa.shape
    assert jnp.allclose(fu, ref_fu, atol=3e-2, rtol=3e-2), "user embeddings mismatch (bf16)"
    assert jnp.allclose(fa, ref_fa, atol=3e-2, rtol=3e-2), "artist embeddings mismatch (bf16)"

    # 2) Exact path: f32 adjacency, streamed-X BlockSpec variant.
    fu32, fa32 = lightgcn_stack(a2u_norm, u2a_norm, x_users, x_artists,
                                num_layers=NUM_LAYERS, adj_dtype=jnp.float32,
                                force_stream_x=True)
    fu32, fa32 = jax.block_until_ready((fu32, fa32))
    assert jnp.allclose(fu32, ref_fu, atol=1e-4, rtol=1e-4), "user embeddings mismatch (f32)"
    assert jnp.allclose(fa32, ref_fa, atol=1e-4, rtol=1e-4), "artist embeddings mismatch (f32)"

    print("KERNEL_OK")
</pallas_src>

<mosaic_0001>
module attributes {stable_mosaic.version = 11 : i64} {
  func.func @_hop_kernel(%arg0: i32, %arg1: i32, %arg2: memref<256x256xbf16, #tpu.memory_space<vmem>>, %arg3: memref<256x128xbf16, #tpu.memory_space<vmem>>, %arg4: memref<256x128xf32, #tpu.memory_space<vmem>>, %arg5: memref<256x128xf32, #tpu.memory_space<vmem>>, %arg6: memref<256x128xf32, #tpu.memory_space<vmem>>) attributes {dimension_semantics = [#tpu.dimension_semantics<parallel>, #tpu.dimension_semantics<arbitrary>], iteration_bounds = array<i64: 1, 1>, scalar_prefetch = 0 : i64, scratch_operands = 0 : i64, tpu.core_type = #tpu.core_type<tc>, window_params = [{transform_indices = @transform_0, window_bounds = array<i64: 256, 256>}, {pipeline_mode = #tpu.pipeline_mode<synchronous>, transform_indices = @transform_1, window_bounds = array<i64: 256, 128>}, {transform_indices = @transform_2, window_bounds = array<i64: 256, 128>}, {transform_indices = @transform_3, window_bounds = array<i64: 256, 128>}, {transform_indices = @transform_4, window_bounds = array<i64: 256, 128>}]} {
    %c0_i32 = arith.constant 0 : i32
    %0 = arith.cmpi eq, %arg1, %c0_i32 : i32
    %1 = arith.extui %0 : i1 to i32
    %c0_i32_0 = arith.constant 0 : i32
    %2 = arith.cmpi ne, %1, %c0_i32_0 : i32
    scf.if %2 {
      %cst_9 = arith.constant 0.000000e+00 : f32
      %15 = vector.broadcast %cst_9 : f32 to vector<256x128xf32>
      %c0_10 = arith.constant 0 : index
      %c0_11 = arith.constant 0 : index
      %16 = vector.load %arg5[%c0_10, %c0_11] : memref<256x128xf32, #tpu.memory_space<vmem>>, vector<256x128xf32>
      tpu.vector_store %arg5[%c0_10, %c0_11], %15 {strides = array<i32>} : memref<256x128xf32, #tpu.memory_space<vmem>>, vector<256x128xf32>,
    } else {
    }
    %c0 = arith.constant 0 : index
    %c0_1 = arith.constant 0 : index
    %3 = vector.load %arg2[%c0, %c0_1] : memref<256x256xbf16, #tpu.memory_space<vmem>>, vector<256x256xbf16>
    %c256_i32 = arith.constant 256 : i32
    %4 = arith.muli %arg1, %c256_i32 : i32
    %5 = tpu.assume_multiple %4, 256 : i32
    %6 = arith.index_cast %5 : i32 to index
    %c0_2 = arith.constant 0 : index
    %7 = vector.load %arg3[%6, %c0_2] : memref<256x128xbf16, #tpu.memory_space<vmem>>, vector<256x128xbf16>
    %c0_3 = arith.constant 0 : index
    %c0_4 = arith.constant 0 : index
    %8 = vector.load %arg5[%c0_3, %c0_4] : memref<256x128xf32, #tpu.memory_space<vmem>>, vector<256x128xf32>
    %cst = arith.constant dense<0.000000e+00> : vector<256x128xf32>
    %9 = tpu.matmul %3, %7, %cst {dimension_numbers = #tpu.dot_dimension_numbers<[1], [0], [0], [1], [0, 0, 1, 1], [], []>} : vector<256x256xbf16>, vector<256x128xbf16>, vector<256x128xf32> -> vector<256x128xf32>
    %10 = arith.addf %8, %9 : vector<256x128xf32>
    %c0_5 = arith.constant 0 : index
    %c0_6 = arith.constant 0 : index
    %11 = vector.load %arg5[%c0_5, %c0_6] : memref<256x128xf32, #tpu.memory_space<vmem>>, vector<256x128xf32>
    tpu.vector_store %arg5[%c0_5, %c0_6], %10 {strides = array<i32>} : memref<256x128xf32, #tpu.memory_space<vmem>>, vector<256x128xf32>,
    %c0_i32_7 = arith.constant 0 : i32
    %12 = arith.cmpi eq, %arg1, %c0_i32_7 : i32
    %13 = arith.extui %12 : i1 to i32
    %c0_i32_8 = arith.constant 0 : i32
    %14 = arith.cmpi ne, %13, %c0_i32_8 : i32
    scf.if %14 {
      %c0_9 = arith.constant 0 : index
      %c0_10 = arith.constant 0 : index
      %15 = vector.load %arg4[%c0_9, %c0_10] : memref<256x128xf32, #tpu.memory_space<vmem>>, vector<256x128xf32>
      %c0_11 = arith.constant 0 : index
      %c0_12 = arith.constant 0 : index
      %16 = vector.load %arg5[%c0_11, %c0_12] : memref<256x128xf32, #tpu.memory_space<vmem>>, vector<256x128xf32>
      %cst_13 = arith.constant 0.333333343 : f32
      %17 = vector.broadcast %cst_13 : f32 to vector<256x128xf32>
      %18 = arith.mulf %16, %17 : vector<256x128xf32>
      %19 = arith.addf %15, %18 : vector<256x128xf32>
      %c0_14 = arith.constant 0 : index
      %c0_15 = arith.constant 0 : index
      %20 = vector.load %arg6[%c0_14, %c0_15] : memref<256x128xf32, #tpu.memory_space<vmem>>, vector<256x128xf32>
      tpu.vector_store %arg6[%c0_14, %c0_15], %19 {strides = array<i32>} : memref<256x128xf32, #tpu.memory_space<vmem>>, vector<256x128xf32>,
    } else {
    }
    return
  }
  func.func @transform_0(%arg0: i32, %arg1: i32) -> (i32, i32) {
    %c0_i32 = arith.constant 0 : i32
    return %arg0, %arg1 : i32, i32
  }
  func.func @transform_1(%arg0: i32, %arg1: i32) -> (i32, i32) {
    %c0_i32 = arith.constant 0 : i32
    %c0_i32_0 = arith.constant 0 : i32
    %c0_i32_1 = arith.constant 0 : i32
    return %c0_i32, %c0_i32_0 : i32, i32
  }
  func.func @transform_2(%arg0: i32, %arg1: i32) -> (i32, i32) {
    %c0_i32 = arith.constant 0 : i32
    %c0_i32_0 = arith.constant 0 : i32
    return %arg0, %c0_i32 : i32, i32
  }
  func.func @transform_3(%arg0: i32, %arg1: i32) -> (i32, i32) {
    %c0_i32 = arith.constant 0 : i32
    %c0_i32_0 = arith.constant 0 : i32
    return %arg0, %c0_i32 : i32, i32
  }
  func.func @transform_4(%arg0: i32, %arg1: i32) -> (i32, i32) {
    %c0_i32 = arith.constant 0 : i32
    %c0_i32_0 = arith.constant 0 : i32
    return %arg0, %c0_i32 : i32, i32
  }
}

module attributes {stable_mosaic.version = 11 : i64} {
  func.func @_hop_kernel(%arg0: i32, %arg1: i32, %arg2: memref<256x256xbf16, #tpu.memory_space<vmem>>, %arg3: memref<256x128xbf16, #tpu.memory_space<vmem>>, %arg4: memref<256x128xf32, #tpu.memory_space<vmem>>, %arg5: memref<256x128xf32, #tpu.memory_space<vmem>>, %arg6: memref<256x128xf32, #tpu.memory_space<vmem>>) attributes {dimension_semantics = [#tpu.dimension_semantics<parallel>, #tpu.dimension_semantics<arbitrary>], iteration_bounds = array<i64: 1, 1>, scalar_prefetch = 0 : i64, scratch_operands = 1 : i64, tpu.core_type = #tpu.core_type<tc>, window_params = [{transform_indices = @transform_0, window_bounds = array<i64: 256, 256>}, {pipeline_mode = #tpu.pipeline_mode<synchronous>, transform_indices = @transform_1, window_bounds = array<i64: 256, 128>}, {transform_indices = @transform_2, window_bounds = array<i64: 256, 128>}, {transform_indices = @transform_3, window_bounds = array<i64: 256, 128>}]} {
    %c0_i32 = arith.constant 0 : i32
    %0 = arith.cmpi eq, %arg1, %c0_i32 : i32
    %1 = arith.extui %0 : i1 to i32
    %c0_i32_0 = arith.constant 0 : i32
    %2 = arith.cmpi ne, %1, %c0_i32_0 : i32
    scf.if %2 {
      %cst_9 = arith.constant 0.000000e+00 : f32
      %15 = vector.broadcast %cst_9 : f32 to vector<256x128xf32>
      %c0_10 = arith.constant 0 : index
      %c0_11 = arith.constant 0 : index
      %16 = vector.load %arg6[%c0_10, %c0_11] : memref<256x128xf32, #tpu.memory_space<vmem>>, vector<256x128xf32>
      tpu.vector_store %arg6[%c0_10, %c0_11], %15 {strides = array<i32>} : memref<256x128xf32, #tpu.memory_space<vmem>>, vector<256x128xf32>,
    } else {
    }
    %c0 = arith.constant 0 : index
    %c0_1 = arith.constant 0 : index
    %3 = vector.load %arg2[%c0, %c0_1] : memref<256x256xbf16, #tpu.memory_space<vmem>>, vector<256x256xbf16>
    %c256_i32 = arith.constant 256 : i32
    %4 = arith.muli %arg1, %c256_i32 : i32
    %5 = tpu.assume_multiple %4, 256 : i32
    %6 = arith.index_cast %5 : i32 to index
    %c0_2 = arith.constant 0 : index
    %7 = vector.load %arg3[%6, %c0_2] : memref<256x128xbf16, #tpu.memory_space<vmem>>, vector<256x128xbf16>
    %c0_3 = arith.constant 0 : index
    %c0_4 = arith.constant 0 : index
    %8 = vector.load %arg6[%c0_3, %c0_4] : memref<256x128xf32, #tpu.memory_space<vmem>>, vector<256x128xf32>
    %cst = arith.constant dense<0.000000e+00> : vector<256x128xf32>
    %9 = tpu.matmul %3, %7, %cst {dimension_numbers = #tpu.dot_dimension_numbers<[1], [0], [0], [1], [0, 0, 1, 1], [], []>} : vector<256x256xbf16>, vector<256x128xbf16>, vector<256x128xf32> -> vector<256x128xf32>
    %10 = arith.addf %8, %9 : vector<256x128xf32>
    %c0_5 = arith.constant 0 : index
    %c0_6 = arith.constant 0 : index
    %11 = vector.load %arg6[%c0_5, %c0_6] : memref<256x128xf32, #tpu.memory_space<vmem>>, vector<256x128xf32>
    tpu.vector_store %arg6[%c0_5, %c0_6], %10 {strides = array<i32>} : memref<256x128xf32, #tpu.memory_space<vmem>>, vector<256x128xf32>,
    %c0_i32_7 = arith.constant 0 : i32
    %12 = arith.cmpi eq, %arg1, %c0_i32_7 : i32
    %13 = arith.extui %12 : i1 to i32
    %c0_i32_8 = arith.constant 0 : i32
    %14 = arith.cmpi ne, %13, %c0_i32_8 : i32
    scf.if %14 {
      %c0_9 = arith.constant 0 : index
      %c0_10 = arith.constant 0 : index
      %15 = vector.load %arg4[%c0_9, %c0_10] : memref<256x128xf32, #tpu.memory_space<vmem>>, vector<256x128xf32>
      %c0_11 = arith.constant 0 : index
      %c0_12 = arith.constant 0 : index
      %16 = vector.load %arg6[%c0_11, %c0_12] : memref<256x128xf32, #tpu.memory_space<vmem>>, vector<256x128xf32>
      %cst_13 = arith.constant 0.333333343 : f32
      %17 = vector.broadcast %cst_13 : f32 to vector<256x128xf32>
      %18 = arith.mulf %16, %17 : vector<256x128xf32>
      %19 = arith.addf %15, %18 : vector<256x128xf32>
      %c0_14 = arith.constant 0 : index
      %c0_15 = arith.constant 0 : index
      %20 = vector.load %arg5[%c0_14, %c0_15] : memref<256x128xf32, #tpu.memory_space<vmem>>, vector<256x128xf32>
      tpu.vector_store %arg5[%c0_14, %c0_15], %19 {strides = array<i32>} : memref<256x128xf32, #tpu.memory_space<vmem>>, vector<256x128xf32>,
    } else {
    }
    return
  }
  func.func @transform_0(%arg0: i32, %arg1: i32) -> (i32, i32) {
    %c0_i32 = arith.constant 0 : i32
    return %arg0, %arg1 : i32, i32
  }
  func.func @transform_1(%arg0: i32, %arg1: i32) -> (i32, i32) {
    %c0_i32 = arith.constant 0 : i32
    %c0_i32_0 = arith.constant 0 : i32
    %c0_i32_1 = arith.constant 0 : i32
    return %c0_i32, %c0_i32_0 : i32, i32
  }
  func.func @transform_2(%arg0: i32, %arg1: i32) -> (i32, i32) {
    %c0_i32 = arith.constant 0 : i32
    %c0_i32_0 = arith.constant 0 : i32
    return %arg0, %c0_i32 : i32, i32
  }
  func.func @transform_3(%arg0: i32, %arg1: i32) -> (i32, i32) {
    %c0_i32 = arith.constant 0 : i32
    %c0_i32_0 = arith.constant 0 : i32
    return %arg0, %c0_i32 : i32, i32
  }
}

</mosaic_0001>

<bundles_post_ra>
// kernel: lightgcn_stack_forward.7
= control target key start
LH: loop header
LB: loop body
LE: loop exit
PB: predicated region body
PF: predicated region fallthrough
CT: control target
= control target key end

     0   :  { %s1526_s1 = inlined_call_operand.vmem [shape: bf16[256,128], index: 1, kind: input, shape index: {}]   ;;  %s1527_s0 = inlined_call_operand.vmem [shape: bf16[256,256], index: 0, kind: input, shape index: {}]   ;;  %s1528_s2 = inlined_call_operand.vmem [shape: f32[256,128], index: 2, kind: input, shape index: {}, may-alias: {2,3}]   ;;  %s1529_s3 = inlined_call_operand.vmem [shape: f32[256,128], index: 3, kind: output, shape index: {}, may-alias: {2,3}]  }
   0x1   :  { %v1049_v0 = vld [vmem:[%s1526_s1 + $0x38] sm:$0xff]  ;;  %v1048_v2 = vld [vmem:[%s1526_s1 + $0x30] sm:$0xff]  ;;  %v1047_v4 = vld [vmem:[%s1526_s1 + $0x28] sm:$0xff] }
   0x2   :  { %v1057_v1 = vld [vmem:[%s1526_s1 + $0x78] sm:$0xff]  ;;  %407 = vmatpush.bf16.msra.mxu0 %v1049_v0  ;;  %1058 = vmatpush.bf16.msra.mxu2 %v1049_v0  ;;  %v1056_v3 = vld [vmem:[%s1526_s1 + $0x70] sm:$0xff]  ;;  %v1055_v5 = vld [vmem:[%s1526_s1 + $0x68] sm:$0xff] }
   0x3   :  { %496 = vmatpush.bf16.msra.mxu1 %v1057_v1  ;;  %1066 = vmatpush.bf16.msra.mxu3 %v1057_v1  ;;  %v1046_v6 = vld [vmem:[%s1526_s1 + $0x20] sm:$0xff]  ;;  %v1045_v8 = vld [vmem:[%s1526_s1 + $0x18] sm:$0xff]  ;;  %v1044_v10 = vld [vmem:[%s1526_s1 + $0x10] sm:$0xff] }
   0x4   :  { %v1054_v7 = vld [vmem:[%s1526_s1 + $0x60] sm:$0xff]  ;;  %v1053_v9 = vld [vmem:[%s1526_s1 + $0x58] sm:$0xff]  ;;  %v1052_v11 = vld [vmem:[%s1526_s1 + $0x50] sm:$0xff] }
   0x5   :  { %v1043_v12 = vld [vmem:[%s1526_s1 + $0x8] sm:$0xff]  ;;  %v1042_v14 = vld [vmem:[%s1526_s1] sm:$0xff]  ;;  %v828_v28 = vld [vmem:[%s1527_s0 + $0x10] sm:$0xf] }
   0x6   :  { %408 = vmatpush.bf16.msra.mxu0 %v1048_v2  ;;  %1059 = vmatpush.bf16.msra.mxu2 %v1048_v2  ;;  %v1051_v13 = vld [vmem:[%s1526_s1 + $0x48] sm:$0xff]  ;;  %v1050_v15 = vld [vmem:[%s1526_s1 + $0x40] sm:$0xff]  ;;  %v1013_v29 = vld [vmem:[%s1527_s0 + $0x14] sm:$0xf0] }
   0x7   :  { %497 = vmatpush.bf16.msra.mxu1 %v1056_v3  ;;  %1067 = vmatpush.bf16.msra.mxu3 %v1056_v3  ;;  %v820_v16 = vld [vmem:[%s1527_s0] sm:$0xf]  ;;  %v1011_v17 = vld [vmem:[%s1527_s0 + $0x4] sm:$0xf0]  ;;  %v1010_v20 = vld [vmem:[%s1527_s0 + $0x4] sm:$0xf]  ;;  %v829_v36 = vor.u32 %v1013_v29, %v828_v28 }
   0x8   :  { %v884_v18 = vld [vmem:[%s1527_s0 + $0x80] sm:$0xf]  ;;  %v1027_v19 = vld [vmem:[%s1527_s0 + $0x84] sm:$0xf0]  ;;  %v822_v21 = vld [vmem:[%s1527_s0 + $0x8] sm:$0xf0]  ;;  %v821_v24 = vor.u32 %v1011_v17, %v820_v16 }
   0x9   :  { %v1026_v22 = vld [vmem:[%s1527_s0 + $0x84] sm:$0xf]  ;;  %v886_v23 = vld [vmem:[%s1527_s0 + $0x88] sm:$0xf0]  ;;  %v885_v25 = vor.u32 %v1027_v19, %v884_v18  ;;  %v825_v26 = vor.u32 %v1010_v20, %v822_v21  ;;  %v892_v30 = vld [vmem:[%s1527_s0 + $0x90] sm:$0xf] }
   0xa   :  { %409 = vmatpush.bf16.msra.mxu0 %v1047_v4  ;;  %1060 = vmatpush.bf16.msra.mxu2 %v1047_v4  ;;  %v889_v27 = vor.u32 %v1026_v22, %v886_v23  ;;  %v1029_v31 = vld [vmem:[%s1527_s0 + $0x94] sm:$0xf0]  ;;  %v1012_v32 = vld [vmem:[%s1527_s0 + $0x14] sm:$0xf]  ;;  %v830_v33 = vld [vmem:[%s1527_s0 + $0x18] sm:$0xf0] }
   0xb   :  { %498 = vmatpush.bf16.msra.mxu1 %v1055_v5  ;;  %1068 = vmatpush.bf16.msra.mxu3 %v1055_v5  ;;  %v1028_v34 = vld [vmem:[%s1527_s0 + $0x94] sm:$0xf]  ;;  %v894_v35 = vld [vmem:[%s1527_s0 + $0x98] sm:$0xf0]  ;;  %v893_v37 = vor.u32 %v1029_v31, %v892_v30  ;;  %v833_v38 = vor.u32 %v1012_v32, %v830_v33  ;;  %v836_v40 = vld [vmem:[%s1527_s0 + $0x20] sm:$0xf] }
   0xc   :  { %v897_v39 = vor.u32 %v1028_v34, %v894_v35  ;;  %v1015_v41 = vld [vmem:[%s1527_s0 + $0x24] sm:$0xf0]  ;;  %v900_v42 = vld [vmem:[%s1527_s0 + $0xa0] sm:$0xf]  ;;  %v1014_v44 = vld [vmem:[%s1527_s0 + $0x24] sm:$0xf] }
   0xd   :  { %v1031_v43 = vld [vmem:[%s1527_s0 + $0xa4] sm:$0xf0]  ;;  %v838_v45 = vld [vmem:[%s1527_s0 + $0x28] sm:$0xf0]  ;;  %v1030_v46 = vld [vmem:[%s1527_s0 + $0xa4] sm:$0xf]  ;;  %v837_v48 = vor.u32 %v1015_v41, %v836_v40 }
   0xe   :  { %410 = vmatpush.bf16.msra.mxu0 %v1046_v6  ;;  %1061 = vmatpush.bf16.msra.mxu2 %v1046_v6  ;;  %v902_v47 = vld [vmem:[%s1527_s0 + $0xa8] sm:$0xf0]  ;;  %v901_v49 = vor.u32 %v1031_v43, %v900_v42  ;;  %v841_v50 = vor.u32 %v1014_v44, %v838_v45  ;;  %v844_v52 = vld [vmem:[%s1527_s0 + $0x30] sm:$0xf]  ;;  %v1017_v53 = vld [vmem:[%s1527_s0 + $0x34] sm:$0xf0] }
   0xf   :  { %499 = vmatpush.bf16.msra.mxu1 %v1054_v7  ;;  %1069 = vmatpush.bf16.msra.mxu3 %v1054_v7  ;;  %v905_v51 = vor.u32 %v1030_v46, %v902_v47  ;;  %v908_v54 = vld [vmem:[%s1527_s0 + $0xb0] sm:$0xf]  ;;  %v1033_v55 = vld [vmem:[%s1527_s0 + $0xb4] sm:$0xf0]  ;;  %v1016_v56 = vld [vmem:[%s1527_s0 + $0x34] sm:$0xf]  ;;  %v845_v60 = vor.u32 %v1017_v53, %v844_v52 }
  0x10   :  { %v846_v57 = vld [vmem:[%s1527_s0 + $0x38] sm:$0xf0]  ;;  %v1032_v58 = vld [vmem:[%s1527_s0 + $0xb4] sm:$0xf]  ;;  %v909_v61 = vor.u32 %v1033_v55, %v908_v54  ;;  %v852_v0 = vld [vmem:[%s1527_s0 + $0x40] sm:$0xf] }
  0x11   :  { %v910_v59 = vld [vmem:[%s1527_s0 + $0xb8] sm:$0xf0]  ;;  %v849_v62 = vor.u32 %v1016_v56, %v846_v57  ;;  %v1019_v1 = vld [vmem:[%s1527_s0 + $0x44] sm:$0xf0]  ;;  %v916_v2 = vld [vmem:[%s1527_s0 + $0xc0] sm:$0xf] }
  0x12   :  { %411 = vmatpush.bf16.msra.mxu0 %v1045_v8  ;;  %1062 = vmatpush.bf16.msra.mxu2 %v1045_v8  ;;  %v913_v63 = vor.u32 %v1032_v58, %v910_v59  ;;  %v1035_v3 = vld [vmem:[%s1527_s0 + $0xc4] sm:$0xf0]  ;;  %v1018_v4 = vld [vmem:[%s1527_s0 + $0x44] sm:$0xf]  ;;  %v854_v5 = vld [vmem:[%s1527_s0 + $0x48] sm:$0xf0]  ;;  %v853_v8 = vor.u32 %v1019_v1, %v852_v0 }
  0x13   :  { %500 = vmatpush.bf16.msra.mxu1 %v1053_v9  ;;  %1070 = vmatpush.bf16.msra.mxu3 %v1053_v9  ;;  %v1034_v6 = vld [vmem:[%s1527_s0 + $0xc4] sm:$0xf]  ;;  %v918_v7 = vld [vmem:[%s1527_s0 + $0xc8] sm:$0xf0]  ;;  %v917_v9 = vor.u32 %v1035_v3, %v916_v2  ;;  %v1020_v16 = vld [vmem:[%s1527_s0 + $0x54] sm:$0xf] }
  0x14   :  { %v862_v17 = vld [vmem:[%s1527_s0 + $0x58] sm:$0xf0]  ;;  %v1036_v18 = vld [vmem:[%s1527_s0 + $0xd4] sm:$0xf]  ;;  %v1022_v28 = vld [vmem:[%s1527_s0 + $0x64] sm:$0xf] }
  0x15   :  { %v926_v19 = vld [vmem:[%s1527_s0 + $0xd8] sm:$0xf0]  ;;  %v865_v22 = vor.u32 %v1020_v16, %v862_v17  ;;  %v870_v29 = vld [vmem:[%s1527_s0 + $0x68] sm:$0xf0]  ;;  %v1038_v30 = vld [vmem:[%s1527_s0 + $0xe4] sm:$0xf] }
  0x16   :  { %412 = vmatpush.bf16.msra.mxu0 %v1044_v10  ;;  %1063 = vmatpush.bf16.msra.mxu2 %v1044_v10  ;;  %v857_v10 = vor.u32 %v1018_v4, %v854_v5  ;;  %v929_v23 = vor.u32 %v1036_v18, %v926_v19  ;;  %v934_v31 = vld [vmem:[%s1527_s0 + $0xe8] sm:$0xf0]  ;;  %v873_v34 = vor.u32 %v1022_v28, %v870_v29  ;;  %v1024_v40 = vld [vmem:[%s1527_s0 + $0x74] sm:$0xf]  ;;  %v878_v41 = vld [vmem:[%s1527_s0 + $0x78] sm:$0xf0] }
  0x17   :  { %501 = vmatpush.bf16.msra.mxu1 %v1052_v11  ;;  %1071 = vmatpush.bf16.msra.mxu3 %v1052_v11  ;;  %v921_v11 = vor.u32 %v1034_v6, %v918_v7  ;;  %v937_v35 = vor.u32 %v1038_v30, %v934_v31  ;;  %v1040_v42 = vld [vmem:[%s1527_s0 + $0xf4] sm:$0xf]  ;;  %v942_v43 = vld [vmem:[%s1527_s0 + $0xf8] sm:$0xf0]  ;;  %v881_v46 = vor.u32 %v1024_v40, %v878_v41 }
  0x18   :  { %v945_v47 = vor.u32 %v1040_v42, %v942_v43 }
  0x1a   :  { %413 = vmatpush.bf16.msra.mxu0 %v1043_v12  ;;  %1064 = vmatpush.bf16.msra.mxu2 %v1043_v12  ;;  %v860_v12 = vld [vmem:[%s1527_s0 + $0x50] sm:$0xf] }
  0x1b   :  { %502 = vmatpush.bf16.msra.mxu1 %v1051_v13  ;;  %1072 = vmatpush.bf16.msra.mxu3 %v1051_v13  ;;  %v1021_v13 = vld [vmem:[%s1527_s0 + $0x54] sm:$0xf0] }
  0x1c   :  { %v861_v20 = vor.u32 %v1021_v13, %v860_v12 }
  0x1e   :  { %414 = vmatpush.bf16.msra.mxu0 %v1042_v14  ;;  %1065 = vmatpush.bf16.msra.mxu2 %v1042_v14  ;;  %v924_v14 = vld [vmem:[%s1527_s0 + $0xd0] sm:$0xf] }
  0x1f   :  { %503 = vmatpush.bf16.msra.mxu1 %v1050_v15  ;;  %1073 = vmatpush.bf16.msra.mxu3 %v1050_v15  ;;  %v1037_v15 = vld [vmem:[%s1527_s0 + $0xd4] sm:$0xf0] }
  0x20   :  { %v925_v21 = vor.u32 %v1037_v15, %v924_v14 }
  0x21   :  { %415 = vmatmul.bf16.vlgmr.msra.gmra.mxu0 %v821_v24  ;;  %455 = vmatmul.bf16.vlgmr.msra.gmra.mxu2 %v885_v25  ;;  %v868_v24 = vld [vmem:[%s1527_s0 + $0x60] sm:$0xf]  ;;  %v1023_v25 = vld [vmem:[%s1527_s0 + $0x64] sm:$0xf0] }
  0x22   :  { %504 = vmatmul.bf16.vlgmr.msra.gmra.mxu1 %v825_v26  ;;  %544 = vmatmul.bf16.vlgmr.msra.gmra.mxu3 %v889_v27  ;;  %v932_v26 = vld [vmem:[%s1527_s0 + $0xe0] sm:$0xf]  ;;  %v1039_v27 = vld [vmem:[%s1527_s0 + $0xe4] sm:$0xf0]  ;;  %v869_v32 = vor.u32 %v1023_v25, %v868_v24 }
  0x23   :  { %v933_v33 = vor.u32 %v1039_v27, %v932_v26 }
  0x31   :  { %420 = vmatmul.bf16.gmra.mxu0 %v829_v36  ;;  %460 = vmatmul.bf16.gmra.mxu2 %v893_v37  ;;  %v876_v36 = vld [vmem:[%s1527_s0 + $0x70] sm:$0xf]  ;;  %v1025_v37 = vld [vmem:[%s1527_s0 + $0x74] sm:$0xf0] }
  0x32   :  { %509 = vmatmul.bf16.gmra.mxu1 %v833_v38  ;;  %549 = vmatmul.bf16.gmra.mxu3 %v897_v39  ;;  %v940_v38 = vld [vmem:[%s1527_s0 + $0xf0] sm:$0xf]  ;;  %v1041_v39 = vld [vmem:[%s1527_s0 + $0xf4] sm:$0xf0]  ;;  %v877_v44 = vor.u32 %v1025_v37, %v876_v36 }
  0x33   :  { %v941_v45 = vor.u32 %v1041_v39, %v940_v38 }
  0x41   :  { %425 = vmatmul.bf16.gmra.mxu0 %v837_v48  ;;  %465 = vmatmul.bf16.gmra.mxu2 %v901_v49 }
  0x42   :  { %514 = vmatmul.bf16.gmra.mxu1 %v841_v50  ;;  %554 = vmatmul.bf16.gmra.mxu3 %v905_v51  ;;  %v652_v51 = vld [vmem:[%s1528_s2] sm:$0xff] }
  0x51   :  { %430 = vmatmul.bf16.gmra.mxu0 %v845_v60  ;;  %470 = vmatmul.bf16.gmra.mxu2 %v909_v61 }
  0x52   :  { %519 = vmatmul.bf16.gmra.mxu1 %v849_v62  ;;  %559 = vmatmul.bf16.gmra.mxu3 %v913_v63 }
  0x61   :  { %435 = vmatmul.bf16.gmra.mxu0 %v853_v8  ;;  %475 = vmatmul.bf16.gmra.mxu2 %v917_v9 }
  0x62   :  { %524 = vmatmul.bf16.gmra.mxu1 %v857_v10  ;;  %564 = vmatmul.bf16.gmra.mxu3 %v921_v11 }
  0x71   :  { %440 = vmatmul.bf16.gmra.mxu0 %v861_v20  ;;  %480 = vmatmul.bf16.gmra.mxu2 %v925_v21 }
  0x72   :  { %529 = vmatmul.bf16.gmra.mxu1 %v865_v22  ;;  %569 = vmatmul.bf16.gmra.mxu3 %v929_v23 }
  0x81   :  { %445 = vmatmul.bf16.gmra.mxu0 %v869_v32  ;;  %485 = vmatmul.bf16.gmra.mxu2 %v933_v33 }
  0x82   :  { %534 = vmatmul.bf16.gmra.mxu1 %v873_v34  ;;  %574 = vmatmul.bf16.gmra.mxu3 %v937_v35 }
  0x91   :  { %450 = vmatmul.bf16.gmra.mxu0 %v877_v44  ;;  %490 = vmatmul.bf16.gmra.mxu2 %v941_v45 }
  0x92   :  { %539 = vmatmul.bf16.gmra.mxu1 %v881_v46  ;;  %579 = vmatmul.bf16.gmra.mxu3 %v945_v47 }
  0x9e   :  { %v416_v48 = vpop.f32.mrf.mxu0 }
  0x9f   :  { %v505_v49 = vpop.f32.mrf.mxu1 }
  0xa0   :  { %v506_v50 = vadd.f32 %v505_v49, %v416_v48 }
  0xa2   :  { %v716_v52 = vmul.f32 0.33333334, %v506_v50 }
  0xa4   :  { %v748_v53 = vadd.f32 %v716_v52, %v652_v51  ;;  %v456_v54 = vpop.f32.mrf.mxu2 }
  0xa5   :  { %v545_v55 = vpop.f32.mrf.mxu3 }
  0xa6   :  { %780 = vst [vmem:[%s1529_s3] sm:$0xff] %v748_v53  ;;  %v546_v56 = vadd.f32 %v545_v55, %v456_v54  ;;  %v418_v57 = vpop.f32.mrf.mxu0 }
  0xa7   :  { %v507_v59 = vpop.f32.mrf.mxu1 }
  0xa8   :  { %v732_v60 = vmul.f32 0.33333334, %v546_v56  ;;  %v508_v61 = vadd.f32 %v507_v59, %v418_v57 }
  0xaa   :  { %v717_v0 = vmul.f32 0.33333334, %v508_v61 }
  0xac   :  { %v458_v2 = vpop.f32.mrf.mxu2 }
  0xad   :  { %v668_v58 = vld [vmem:[%s1528_s2 + $0x80] sm:$0xff]  ;;  %v653_v62 = vld [vmem:[%s1528_s2 + $0x8] sm:$0xff]  ;;  %v547_v3 = vpop.f32.mrf.mxu3 }
  0xae   :  { %v764_v63 = vadd.f32 %v732_v60, %v668_v58  ;;  %v749_v1 = vadd.f32 %v717_v0, %v653_v62  ;;  %v548_v4 = vadd.f32 %v547_v3, %v458_v2  ;;  %v421_v5 = vpop.f32.mrf.mxu0 }
  0xaf   :  { %v510_v7 = vpop.f32.mrf.mxu1 }
  0xb0   :  { %796 = vst [vmem:[%s1529_s3 + $0x80] sm:$0xff] %v764_v63  ;;  %v733_v8 = vmul.f32 0.33333334, %v548_v4  ;;  %v511_v9 = vadd.f32 %v510_v7, %v421_v5 }
  0xb1   :  { %781 = vst [vmem:[%s1529_s3 + $0x8] sm:$0xff] %v749_v1 }
  0xb2   :  { %v718_v12 = vmul.f32 0.33333334, %v511_v9 }
  0xb4   :  { %v461_v14 = vpop.f32.mrf.mxu2 }
  0xb5   :  { %v550_v15 = vpop.f32.mrf.mxu3 }
  0xb6   :  { %v551_v16 = vadd.f32 %v550_v15, %v461_v14  ;;  %v423_v17 = vpop.f32.mrf.mxu0 }
  0xb7   :  { %v512_v19 = vpop.f32.mrf.mxu1 }
  0xb8   :  { %v669_v6 = vld [vmem:[%s1528_s2 + $0x88] sm:$0xff]  ;;  %v654_v10 = vld [vmem:[%s1528_s2 + $0x10] sm:$0xff]  ;;  %v734_v20 = vmul.f32 0.33333334, %v551_v16  ;;  %v513_v21 = vadd.f32 %v512_v19, %v423_v17 }
  0xb9   :  { %v765_v11 = vadd.f32 %v733_v8, %v669_v6  ;;  %v750_v13 = vadd.f32 %v718_v12, %v654_v10 }
  0xba   :  { %v719_v24 = vmul.f32 0.33333334, %v513_v21 }
  0xbb   :  { %797 = vst [vmem:[%s1529_s3 + $0x88] sm:$0xff] %v765_v11 }
  0xbc   :  { %782 = vst [vmem:[%s1529_s3 + $0x10] sm:$0xff] %v750_v13  ;;  %v463_v26 = vpop.f32.mrf.mxu2 }
  0xbd   :  { %v552_v27 = vpop.f32.mrf.mxu3 }
  0xbe   :  { %v553_v28 = vadd.f32 %v552_v27, %v463_v26  ;;  %v426_v29 = vpop.f32.mrf.mxu0 }
  0xbf   :  { %v515_v31 = vpop.f32.mrf.mxu1 }
  0xc0   :  { %v735_v32 = vmul.f32 0.33333334, %v553_v28  ;;  %v516_v33 = vadd.f32 %v515_v31, %v426_v29 }
  0xc2   :  { %v720_v36 = vmul.f32 0.33333334, %v516_v33 }
  0xc3   :  { %v670_v18 = vld [vmem:[%s1528_s2 + $0x90] sm:$0xff]  ;;  %v655_v22 = vld [vmem:[%s1528_s2 + $0x18] sm:$0xff] }
  0xc4   :  { %v766_v23 = vadd.f32 %v734_v20, %v670_v18  ;;  %v751_v25 = vadd.f32 %v719_v24, %v655_v22  ;;  %v466_v38 = vpop.f32.mrf.mxu2 }
  0xc5   :  { %v555_v39 = vpop.f32.mrf.mxu3 }
  0xc6   :  { %798 = vst [vmem:[%s1529_s3 + $0x90] sm:$0xff] %v766_v23  ;;  %v556_v40 = vadd.f32 %v555_v39, %v466_v38  ;;  %v428_v41 = vpop.f32.mrf.mxu0 }
  0xc7   :  { %783 = vst [vmem:[%s1529_s3 + $0x18] sm:$0xff] %v751_v25  ;;  %v517_v43 = vpop.f32.mrf.mxu1 }
  0xc8   :  { %v736_v44 = vmul.f32 0.33333334, %v556_v40  ;;  %v518_v45 = vadd.f32 %v517_v43, %v428_v41 }
  0xca   :  { %v721_v48 = vmul.f32 0.33333334, %v518_v45 }
  0xcc   :  { %v468_v50 = vpop.f32.mrf.mxu2 }
  0xcd   :  { %v557_v51 = vpop.f32.mrf.mxu3 }
  0xce   :  { %v671_v30 = vld [vmem:[%s1528_s2 + $0x98] sm:$0xff]  ;;  %v656_v34 = vld [vmem:[%s1528_s2 + $0x20] sm:$0xff]  ;;  %v558_v52 = vadd.f32 %v557_v51, %v468_v50  ;;  %v431_v53 = vpop.f32.mrf.mxu0 }
  0xcf   :  { %v767_v35 = vadd.f32 %v735_v32, %v671_v30  ;;  %v752_v37 = vadd.f32 %v720_v36, %v656_v34  ;;  %v520_v55 = vpop.f32.mrf.mxu1 }
  0xd0   :  { %v737_v56 = vmul.f32 0.33333334, %v558_v52  ;;  %v521_v57 = vadd.f32 %v520_v55, %v431_v53 }
  0xd1   :  { %799 = vst [vmem:[%s1529_s3 + $0x98] sm:$0xff] %v767_v35 }
  0xd2   :  { %784 = vst [vmem:[%s1529_s3 + $0x20] sm:$0xff] %v752_v37  ;;  %v722_v60 = vmul.f32 0.33333334, %v521_v57 }
  0xd4   :  { %v471_v62 = vpop.f32.mrf.mxu2 }
  0xd5   :  { %v560_v63 = vpop.f32.mrf.mxu3 }
  0xd6   :  { %v561_v0 = vadd.f32 %v560_v63, %v471_v62  ;;  %v433_v1 = vpop.f32.mrf.mxu0 }
  0xd7   :  { %v522_v3 = vpop.f32.mrf.mxu1 }
  0xd8   :  { %v738_v4 = vmul.f32 0.33333334, %v561_v0  ;;  %v523_v5 = vadd.f32 %v522_v3, %v433_v1 }
  0xd9   :  { %v672_v42 = vld [vmem:[%s1528_s2 + $0xa0] sm:$0xff]  ;;  %v657_v46 = vld [vmem:[%s1528_s2 + $0x28] sm:$0xff] }
  0xda   :  { %v768_v47 = vadd.f32 %v736_v44, %v672_v42  ;;  %v753_v49 = vadd.f32 %v721_v48, %v657_v46  ;;  %v723_v8 = vmul.f32 0.33333334, %v523_v5 }
  0xdc   :  { %800 = vst [vmem:[%s1529_s3 + $0xa0] sm:$0xff] %v768_v47  ;;  %v473_v10 = vpop.f32.mrf.mxu2 }
  0xdd   :  { %785 = vst [vmem:[%s1529_s3 + $0x28] sm:$0xff] %v753_v49  ;;  %v562_v11 = vpop.f32.mrf.mxu3 }
  0xde   :  { %v563_v12 = vadd.f32 %v562_v11, %v473_v10  ;;  %v436_v13 = vpop.f32.mrf.mxu0 }
  0xdf   :  { %v525_v15 = vpop.f32.mrf.mxu1 }
  0xe0   :  { %v739_v16 = vmul.f32 0.33333334, %v563_v12  ;;  %v526_v17 = vadd.f32 %v525_v15, %v436_v13 }
  0xe2   :  { %v724_v20 = vmul.f32 0.33333334, %v526_v17 }
  0xe4   :  { %v673_v54 = vld [vmem:[%s1528_s2 + $0xa8] sm:$0xff]  ;;  %v658_v58 = vld [vmem:[%s1528_s2 + $0x30] sm:$0xff]  ;;  %v476_v22 = vpop.f32.mrf.mxu2 }
  0xe5   :  { %v769_v59 = vadd.f32 %v737_v56, %v673_v54  ;;  %v754_v61 = vadd.f32 %v722_v60, %v658_v58  ;;  %v565_v23 = vpop.f32.mrf.mxu3 }
  0xe6   :  { %v566_v24 = vadd.f32 %v565_v23, %v476_v22  ;;  %v438_v25 = vpop.f32.mrf.mxu0 }
  0xe7   :  { %801 = vst [vmem:[%s1529_s3 + $0xa8] sm:$0xff] %v769_v59  ;;  %v527_v27 = vpop.f32.mrf.mxu1 }
  0xe8   :  { %786 = vst [vmem:[%s1529_s3 + $0x30] sm:$0xff] %v754_v61  ;;  %v740_v28 = vmul.f32 0.33333334, %v566_v24  ;;  %v528_v29 = vadd.f32 %v527_v27, %v438_v25 }
  0xea   :  { %v725_v32 = vmul.f32 0.33333334, %v528_v29 }
  0xec   :  { %v478_v34 = vpop.f32.mrf.mxu2 }
  0xed   :  { %v567_v35 = vpop.f32.mrf.mxu3 }
  0xee   :  { %v568_v36 = vadd.f32 %v567_v35, %v478_v34  ;;  %v441_v37 = vpop.f32.mrf.mxu0 }
  0xef   :  { %v674_v2 = vld [vmem:[%s1528_s2 + $0xb0] sm:$0xff]  ;;  %v659_v6 = vld [vmem:[%s1528_s2 + $0x38] sm:$0xff]  ;;  %v530_v39 = vpop.f32.mrf.mxu1 }
  0xf0   :  { %v770_v7 = vadd.f32 %v738_v4, %v674_v2  ;;  %v755_v9 = vadd.f32 %v723_v8, %v659_v6  ;;  %v741_v40 = vmul.f32 0.33333334, %v568_v36  ;;  %v531_v41 = vadd.f32 %v530_v39, %v441_v37 }
  0xf2   :  { %802 = vst [vmem:[%s1529_s3 + $0xb0] sm:$0xff] %v770_v7  ;;  %v726_v44 = vmul.f32 0.33333334, %v531_v41 }
  0xf3   :  { %787 = vst [vmem:[%s1529_s3 + $0x38] sm:$0xff] %v755_v9 }
  0xf4   :  { %v481_v46 = vpop.f32.mrf.mxu2 }
  0xf5   :  { %v570_v47 = vpop.f32.mrf.mxu3 }
  0xf6   :  { %v571_v48 = vadd.f32 %v570_v47, %v481_v46  ;;  %v443_v49 = vpop.f32.mrf.mxu0 }
  0xf7   :  { %v532_v51 = vpop.f32.mrf.mxu1 }
  0xf8   :  { %v742_v52 = vmul.f32 0.33333334, %v571_v48  ;;  %v533_v53 = vadd.f32 %v532_v51, %v443_v49 }
  0xfa   :  { %v675_v14 = vld [vmem:[%s1528_s2 + $0xb8] sm:$0xff]  ;;  %v660_v18 = vld [vmem:[%s1528_s2 + $0x40] sm:$0xff]  ;;  %v727_v56 = vmul.f32 0.33333334, %v533_v53 }
  0xfb   :  { %v771_v19 = vadd.f32 %v739_v16, %v675_v14  ;;  %v756_v21 = vadd.f32 %v724_v20, %v660_v18 }
  0xfc   :  { %v483_v58 = vpop.f32.mrf.mxu2 }
  0xfd   :  { %803 = vst [vmem:[%s1529_s3 + $0xb8] sm:$0xff] %v771_v19  ;;  %v572_v59 = vpop.f32.mrf.mxu3 }
  0xfe   :  { %788 = vst [vmem:[%s1529_s3 + $0x40] sm:$0xff] %v756_v21  ;;  %v573_v60 = vadd.f32 %v572_v59, %v483_v58  ;;  %v446_v61 = vpop.f32.mrf.mxu0 }
  0xff   :  { %v535_v63 = vpop.f32.mrf.mxu1 }
 0x100   :  { %v743_v0 = vmul.f32 0.33333334, %v573_v60  ;;  %v536_v1 = vadd.f32 %v535_v63, %v446_v61 }
 0x102   :  { %v728_v4 = vmul.f32 0.33333334, %v536_v1 }
 0x104   :  { %v486_v6 = vpop.f32.mrf.mxu2 }
 0x105   :  { %v676_v26 = vld [vmem:[%s1528_s2 + $0xc0] sm:$0xff]  ;;  %v661_v30 = vld [vmem:[%s1528_s2 + $0x48] sm:$0xff]  ;;  %v575_v7 = vpop.f32.mrf.mxu3 }
 0x106   :  { %v772_v31 = vadd.f32 %v740_v28, %v676_v26  ;;  %v757_v33 = vadd.f32 %v725_v32, %v661_v30  ;;  %v576_v8 = vadd.f32 %v575_v7, %v486_v6  ;;  %v448_v9 = vpop.f32.mrf.mxu0 }
 0x107   :  { %v537_v11 = vpop.f32.mrf.mxu1 }
 0x108   :  { %804 = vst [vmem:[%s1529_s3 + $0xc0] sm:$0xff] %v772_v31  ;;  %v744_v12 = vmul.f32 0.33333334, %v576_v8  ;;  %v538_v13 = vadd.f32 %v537_v11, %v448_v9 }
 0x109   :  { %789 = vst [vmem:[%s1529_s3 + $0x48] sm:$0xff] %v757_v33 }
 0x10a   :  { %v729_v16 = vmul.f32 0.33333334, %v538_v13 }
 0x10c   :  { %v488_v18 = vpop.f32.mrf.mxu2 }
 0x10d   :  { %v577_v19 = vpop.f32.mrf.mxu3 }
 0x10e   :  { %v578_v20 = vadd.f32 %v577_v19, %v488_v18  ;;  %v451_v21 = vpop.f32.mrf.mxu0 }
 0x10f   :  { %v540_v23 = vpop.f32.mrf.mxu1 }
 0x110   :  { %v677_v38 = vld [vmem:[%s1528_s2 + $0xc8] sm:$0xff]  ;;  %v662_v42 = vld [vmem:[%s1528_s2 + $0x50] sm:$0xff]  ;;  %v745_v24 = vmul.f32 0.33333334, %v578_v20  ;;  %v541_v25 = vadd.f32 %v540_v23, %v451_v21 }
 0x111   :  { %v773_v43 = vadd.f32 %v741_v40, %v677_v38  ;;  %v758_v45 = vadd.f32 %v726_v44, %v662_v42 }
 0x112   :  { %v730_v28 = vmul.f32 0.33333334, %v541_v25 }
 0x113   :  { %805 = vst [vmem:[%s1529_s3 + $0xc8] sm:$0xff] %v773_v43 }
 0x114   :  { %790 = vst [vmem:[%s1529_s3 + $0x50] sm:$0xff] %v758_v45  ;;  %v491_v30 = vpop.f32.mrf.mxu2 }
 0x115   :  { %v580_v31 = vpop.f32.mrf.mxu3 }
 0x116   :  { %v581_v32 = vadd.f32 %v580_v31, %v491_v30  ;;  %v453_v33 = vpop.f32.mrf.mxu0 }
 0x117   :  { %v542_v35 = vpop.f32.mrf.mxu1 }
 0x118   :  { %v746_v36 = vmul.f32 0.33333334, %v581_v32  ;;  %v543_v37 = vadd.f32 %v542_v35, %v453_v33 }
 0x11a   :  { %v731_v40 = vmul.f32 0.33333334, %v543_v37 }
 0x11b   :  { %v678_v50 = vld [vmem:[%s1528_s2 + $0xd0] sm:$0xff]  ;;  %v663_v54 = vld [vmem:[%s1528_s2 + $0x58] sm:$0xff] }
 0x11c   :  { %v774_v55 = vadd.f32 %v742_v52, %v678_v50  ;;  %v759_v57 = vadd.f32 %v727_v56, %v663_v54  ;;  %v493_v42 = vpop.f32.mrf.mxu2 }
 0x11d   :  { %v582_v43 = vpop.f32.mrf.mxu3 }
 0x11e   :  { %806 = vst [vmem:[%s1529_s3 + $0xd0] sm:$0xff] %v774_v55  ;;  %v583_v44 = vadd.f32 %v582_v43, %v493_v42 }
 0x11f   :  { %791 = vst [vmem:[%s1529_s3 + $0x58] sm:$0xff] %v759_v57 }
 0x120   :  { %v747_v46 = vmul.f32 0.33333334, %v583_v44 }
 0x126   :  { %v679_v62 = vld [vmem:[%s1528_s2 + $0xd8] sm:$0xff]  ;;  %v664_v2 = vld [vmem:[%s1528_s2 + $0x60] sm:$0xff] }
 0x127   :  { %v775_v3 = vadd.f32 %v743_v0, %v679_v62  ;;  %v760_v5 = vadd.f32 %v728_v4, %v664_v2 }
 0x129   :  { %807 = vst [vmem:[%s1529_s3 + $0xd8] sm:$0xff] %v775_v3 }
 0x12a   :  { %792 = vst [vmem:[%s1529_s3 + $0x60] sm:$0xff] %v760_v5 }
 0x131   :  { %v680_v10 = vld [vmem:[%s1528_s2 + $0xe0] sm:$0xff]  ;;  %v665_v14 = vld [vmem:[%s1528_s2 + $0x68] sm:$0xff] }
 0x132   :  { %v776_v15 = vadd.f32 %v744_v12, %v680_v10  ;;  %v761_v17 = vadd.f32 %v729_v16, %v665_v14 }
 0x134   :  { %808 = vst [vmem:[%s1529_s3 + $0xe0] sm:$0xff] %v776_v15 }
 0x135   :  { %793 = vst [vmem:[%s1529_s3 + $0x68] sm:$0xff] %v761_v17 }
 0x13c   :  { %v681_v22 = vld [vmem:[%s1528_s2 + $0xe8] sm:$0xff]  ;;  %v666_v26 = vld [vmem:[%s1528_s2 + $0x70] sm:$0xff] }
 0x13d   :  { %v777_v27 = vadd.f32 %v745_v24, %v681_v22  ;;  %v762_v29 = vadd.f32 %v730_v28, %v666_v26 }
 0x13f   :  { %809 = vst [vmem:[%s1529_s3 + $0xe8] sm:$0xff] %v777_v27 }
 0x140   :  { %794 = vst [vmem:[%s1529_s3 + $0x70] sm:$0xff] %v762_v29 }
 0x147   :  { %v682_v34 = vld [vmem:[%s1528_s2 + $0xf0] sm:$0xff]  ;;  %v667_v38 = vld [vmem:[%s1528_s2 + $0x78] sm:$0xff] }
 0x148   :  { %v778_v39 = vadd.f32 %v746_v36, %v682_v34  ;;  %v763_v41 = vadd.f32 %v731_v40, %v667_v38 }
 0x14a   :  { %810 = vst [vmem:[%s1529_s3 + $0xf0] sm:$0xff] %v778_v39 }
 0x14b   :  { %795 = vst [vmem:[%s1529_s3 + $0x78] sm:$0xff] %v763_v41 }
 0x152   :  { %v683_v45 = vld [vmem:[%s1528_s2 + $0xf8] sm:$0xff] }
 0x153   :  { %v779_v47 = vadd.f32 %v747_v46, %v683_v45 }
 0x155   :  { %811 = vst [vmem:[%s1529_s3 + $0xf8] sm:$0xff] %v779_v47 }

// kernel: lightgcn_stack_forward.4
= control target key start
LH: loop header
LB: loop body
LE: loop exit
PB: predicated region body
PF: predicated region fallthrough
CT: control target
= control target key end

     0   :  { %s1634_s1 = inlined_call_operand.vmem [shape: bf16[256,128], index: 1, kind: input, shape index: {}]   ;;  %s1635_s0 = inlined_call_operand.vmem [shape: bf16[256,256], index: 0, kind: input, shape index: {}]   ;;  %s1636_s2 = inlined_call_operand.vmem [shape: f32[256,128], index: 2, kind: input, shape index: {}, may-alias: {2,4}]   ;;  %s1637_s3 = inlined_call_operand.vmem [shape: f32[256,128], index: 3, kind: output, shape index: {0}]   ;;  %s1638_s4 = inlined_call_operand.vmem [shape: f32[256,128], index: 4, kind: output, shape index: {1}, may-alias: {2,4}]  }
   0x1   :  { %v1055_v0 = vld [vmem:[%s1634_s1 + $0x38] sm:$0xff]  ;;  %v1054_v2 = vld [vmem:[%s1634_s1 + $0x30] sm:$0xff]  ;;  %v1053_v4 = vld [vmem:[%s1634_s1 + $0x28] sm:$0xff] }
   0x2   :  { %v1063_v1 = vld [vmem:[%s1634_s1 + $0x78] sm:$0xff]  ;;  %409 = vmatpush.bf16.msra.mxu0 %v1055_v0  ;;  %1064 = vmatpush.bf16.msra.mxu2 %v1055_v0  ;;  %v1062_v3 = vld [vmem:[%s1634_s1 + $0x70] sm:$0xff]  ;;  %v1061_v5 = vld [vmem:[%s1634_s1 + $0x68] sm:$0xff] }
   0x3   :  { %498 = vmatpush.bf16.msra.mxu1 %v1063_v1  ;;  %1072 = vmatpush.bf16.msra.mxu3 %v1063_v1  ;;  %v1052_v6 = vld [vmem:[%s1634_s1 + $0x20] sm:$0xff]  ;;  %v1051_v8 = vld [vmem:[%s1634_s1 + $0x18] sm:$0xff]  ;;  %v1050_v10 = vld [vmem:[%s1634_s1 + $0x10] sm:$0xff] }
   0x4   :  { %v1060_v7 = vld [vmem:[%s1634_s1 + $0x60] sm:$0xff]  ;;  %v1059_v9 = vld [vmem:[%s1634_s1 + $0x58] sm:$0xff]  ;;  %v1058_v11 = vld [vmem:[%s1634_s1 + $0x50] sm:$0xff] }
   0x5   :  { %v1049_v12 = vld [vmem:[%s1634_s1 + $0x8] sm:$0xff]  ;;  %v1048_v14 = vld [vmem:[%s1634_s1] sm:$0xff]  ;;  %v834_v28 = vld [vmem:[%s1635_s0 + $0x10] sm:$0xf] }
   0x6   :  { %410 = vmatpush.bf16.msra.mxu0 %v1054_v2  ;;  %1065 = vmatpush.bf16.msra.mxu2 %v1054_v2  ;;  %v1057_v13 = vld [vmem:[%s1634_s1 + $0x48] sm:$0xff]  ;;  %v1056_v15 = vld [vmem:[%s1634_s1 + $0x40] sm:$0xff]  ;;  %v1019_v29 = vld [vmem:[%s1635_s0 + $0x14] sm:$0xf0] }
   0x7   :  { %499 = vmatpush.bf16.msra.mxu1 %v1062_v3  ;;  %1073 = vmatpush.bf16.msra.mxu3 %v1062_v3  ;;  %v826_v16 = vld [vmem:[%s1635_s0] sm:$0xf]  ;;  %v1017_v17 = vld [vmem:[%s1635_s0 + $0x4] sm:$0xf0]  ;;  %v1016_v20 = vld [vmem:[%s1635_s0 + $0x4] sm:$0xf]  ;;  %v835_v36 = vor.u32 %v1019_v29, %v834_v28 }
   0x8   :  { %v890_v18 = vld [vmem:[%s1635_s0 + $0x80] sm:$0xf]  ;;  %v1033_v19 = vld [vmem:[%s1635_s0 + $0x84] sm:$0xf0]  ;;  %v828_v21 = vld [vmem:[%s1635_s0 + $0x8] sm:$0xf0]  ;;  %v827_v24 = vor.u32 %v1017_v17, %v826_v16 }
   0x9   :  { %v1032_v22 = vld [vmem:[%s1635_s0 + $0x84] sm:$0xf]  ;;  %v892_v23 = vld [vmem:[%s1635_s0 + $0x88] sm:$0xf0]  ;;  %v891_v25 = vor.u32 %v1033_v19, %v890_v18  ;;  %v831_v26 = vor.u32 %v1016_v20, %v828_v21  ;;  %v898_v30 = vld [vmem:[%s1635_s0 + $0x90] sm:$0xf] }
   0xa   :  { %411 = vmatpush.bf16.msra.mxu0 %v1053_v4  ;;  %1066 = vmatpush.bf16.msra.mxu2 %v1053_v4  ;;  %v895_v27 = vor.u32 %v1032_v22, %v892_v23  ;;  %v1035_v31 = vld [vmem:[%s1635_s0 + $0x94] sm:$0xf0]  ;;  %v1018_v32 = vld [vmem:[%s1635_s0 + $0x14] sm:$0xf]  ;;  %v836_v33 = vld [vmem:[%s1635_s0 + $0x18] sm:$0xf0] }
   0xb   :  { %500 = vmatpush.bf16.msra.mxu1 %v1061_v5  ;;  %1074 = vmatpush.bf16.msra.mxu3 %v1061_v5  ;;  %v1034_v34 = vld [vmem:[%s1635_s0 + $0x94] sm:$0xf]  ;;  %v900_v35 = vld [vmem:[%s1635_s0 + $0x98] sm:$0xf0]  ;;  %v899_v37 = vor.u32 %v1035_v31, %v898_v30  ;;  %v839_v38 = vor.u32 %v1018_v32, %v836_v33  ;;  %v842_v40 = vld [vmem:[%s1635_s0 + $0x20] sm:$0xf] }
   0xc   :  { %v903_v39 = vor.u32 %v1034_v34, %v900_v35  ;;  %v1021_v41 = vld [vmem:[%s1635_s0 + $0x24] sm:$0xf0]  ;;  %v906_v42 = vld [vmem:[%s1635_s0 + $0xa0] sm:$0xf]  ;;  %v1020_v44 = vld [vmem:[%s1635_s0 + $0x24] sm:$0xf] }
   0xd   :  { %v1037_v43 = vld [vmem:[%s1635_s0 + $0xa4] sm:$0xf0]  ;;  %v844_v45 = vld [vmem:[%s1635_s0 + $0x28] sm:$0xf0]  ;;  %v1036_v46 = vld [vmem:[%s1635_s0 + $0xa4] sm:$0xf]  ;;  %v843_v48 = vor.u32 %v1021_v41, %v842_v40 }
   0xe   :  { %412 = vmatpush.bf16.msra.mxu0 %v1052_v6  ;;  %1067 = vmatpush.bf16.msra.mxu2 %v1052_v6  ;;  %v908_v47 = vld [vmem:[%s1635_s0 + $0xa8] sm:$0xf0]  ;;  %v907_v49 = vor.u32 %v1037_v43, %v906_v42  ;;  %v847_v50 = vor.u32 %v1020_v44, %v844_v45  ;;  %v850_v52 = vld [vmem:[%s1635_s0 + $0x30] sm:$0xf]  ;;  %v1023_v53 = vld [vmem:[%s1635_s0 + $0x34] sm:$0xf0] }
   0xf   :  { %501 = vmatpush.bf16.msra.mxu1 %v1060_v7  ;;  %1075 = vmatpush.bf16.msra.mxu3 %v1060_v7  ;;  %v911_v51 = vor.u32 %v1036_v46, %v908_v47  ;;  %v914_v54 = vld [vmem:[%s1635_s0 + $0xb0] sm:$0xf]  ;;  %v1039_v55 = vld [vmem:[%s1635_s0 + $0xb4] sm:$0xf0]  ;;  %v1022_v56 = vld [vmem:[%s1635_s0 + $0x34] sm:$0xf]  ;;  %v851_v60 = vor.u32 %v1023_v53, %v850_v52 }
  0x10   :  { %v852_v57 = vld [vmem:[%s1635_s0 + $0x38] sm:$0xf0]  ;;  %v1038_v58 = vld [vmem:[%s1635_s0 + $0xb4] sm:$0xf]  ;;  %v915_v61 = vor.u32 %v1039_v55, %v914_v54  ;;  %v858_v0 = vld [vmem:[%s1635_s0 + $0x40] sm:$0xf] }
  0x11   :  { %v916_v59 = vld [vmem:[%s1635_s0 + $0xb8] sm:$0xf0]  ;;  %v855_v62 = vor.u32 %v1022_v56, %v852_v57  ;;  %v1025_v1 = vld [vmem:[%s1635_s0 + $0x44] sm:$0xf0]  ;;  %v922_v2 = vld [vmem:[%s1635_s0 + $0xc0] sm:$0xf] }
  0x12   :  { %413 = vmatpush.bf16.msra.mxu0 %v1051_v8  ;;  %1068 = vmatpush.bf16.msra.mxu2 %v1051_v8  ;;  %v919_v63 = vor.u32 %v1038_v58, %v916_v59  ;;  %v1041_v3 = vld [vmem:[%s1635_s0 + $0xc4] sm:$0xf0]  ;;  %v1024_v4 = vld [vmem:[%s1635_s0 + $0x44] sm:$0xf]  ;;  %v860_v5 = vld [vmem:[%s1635_s0 + $0x48] sm:$0xf0]  ;;  %v859_v8 = vor.u32 %v1025_v1, %v858_v0 }
  0x13   :  { %502 = vmatpush.bf16.msra.mxu1 %v1059_v9  ;;  %1076 = vmatpush.bf16.msra.mxu3 %v1059_v9  ;;  %v1040_v6 = vld [vmem:[%s1635_s0 + $0xc4] sm:$0xf]  ;;  %v924_v7 = vld [vmem:[%s1635_s0 + $0xc8] sm:$0xf0]  ;;  %v923_v9 = vor.u32 %v1041_v3, %v922_v2  ;;  %v1026_v16 = vld [vmem:[%s1635_s0 + $0x54] sm:$0xf] }
  0x14   :  { %v868_v17 = vld [vmem:[%s1635_s0 + $0x58] sm:$0xf0]  ;;  %v1042_v18 = vld [vmem:[%s1635_s0 + $0xd4] sm:$0xf]  ;;  %v1028_v28 = vld [vmem:[%s1635_s0 + $0x64] sm:$0xf] }
  0x15   :  { %v932_v19 = vld [vmem:[%s1635_s0 + $0xd8] sm:$0xf0]  ;;  %v871_v22 = vor.u32 %v1026_v16, %v868_v17  ;;  %v876_v29 = vld [vmem:[%s1635_s0 + $0x68] sm:$0xf0]  ;;  %v1044_v30 = vld [vmem:[%s1635_s0 + $0xe4] sm:$0xf] }
  0x16   :  { %414 = vmatpush.bf16.msra.mxu0 %v1050_v10  ;;  %1069 = vmatpush.bf16.msra.mxu2 %v1050_v10  ;;  %v863_v10 = vor.u32 %v1024_v4, %v860_v5  ;;  %v935_v23 = vor.u32 %v1042_v18, %v932_v19  ;;  %v940_v31 = vld [vmem:[%s1635_s0 + $0xe8] sm:$0xf0]  ;;  %v879_v34 = vor.u32 %v1028_v28, %v876_v29  ;;  %v1030_v40 = vld [vmem:[%s1635_s0 + $0x74] sm:$0xf]  ;;  %v884_v41 = vld [vmem:[%s1635_s0 + $0x78] sm:$0xf0] }
  0x17   :  { %503 = vmatpush.bf16.msra.mxu1 %v1058_v11  ;;  %1077 = vmatpush.bf16.msra.mxu3 %v1058_v11  ;;  %v927_v11 = vor.u32 %v1040_v6, %v924_v7  ;;  %v943_v35 = vor.u32 %v1044_v30, %v940_v31  ;;  %v1046_v42 = vld [vmem:[%s1635_s0 + $0xf4] sm:$0xf]  ;;  %v948_v43 = vld [vmem:[%s1635_s0 + $0xf8] sm:$0xf0]  ;;  %v887_v46 = vor.u32 %v1030_v40, %v884_v41 }
  0x18   :  { %v951_v47 = vor.u32 %v1046_v42, %v948_v43 }
  0x1a   :  { %415 = vmatpush.bf16.msra.mxu0 %v1049_v12  ;;  %1070 = vmatpush.bf16.msra.mxu2 %v1049_v12  ;;  %v866_v12 = vld [vmem:[%s1635_s0 + $0x50] sm:$0xf] }
  0x1b   :  { %504 = vmatpush.bf16.msra.mxu1 %v1057_v13  ;;  %1078 = vmatpush.bf16.msra.mxu3 %v1057_v13  ;;  %v1027_v13 = vld [vmem:[%s1635_s0 + $0x54] sm:$0xf0] }
  0x1c   :  { %v867_v20 = vor.u32 %v1027_v13, %v866_v12 }
  0x1e   :  { %416 = vmatpush.bf16.msra.mxu0 %v1048_v14  ;;  %1071 = vmatpush.bf16.msra.mxu2 %v1048_v14  ;;  %v930_v14 = vld [vmem:[%s1635_s0 + $0xd0] sm:$0xf] }
  0x1f   :  { %505 = vmatpush.bf16.msra.mxu1 %v1056_v15  ;;  %1079 = vmatpush.bf16.msra.mxu3 %v1056_v15  ;;  %v1043_v15 = vld [vmem:[%s1635_s0 + $0xd4] sm:$0xf0] }
  0x20   :  { %v931_v21 = vor.u32 %v1043_v15, %v930_v14 }
  0x21   :  { %417 = vmatmul.bf16.vlgmr.msra.gmra.mxu0 %v827_v24  ;;  %457 = vmatmul.bf16.vlgmr.msra.gmra.mxu2 %v891_v25  ;;  %v874_v24 = vld [vmem:[%s1635_s0 + $0x60] sm:$0xf]  ;;  %v1029_v25 = vld [vmem:[%s1635_s0 + $0x64] sm:$0xf0] }
  0x22   :  { %506 = vmatmul.bf16.vlgmr.msra.gmra.mxu1 %v831_v26  ;;  %546 = vmatmul.bf16.vlgmr.msra.gmra.mxu3 %v895_v27  ;;  %v938_v26 = vld [vmem:[%s1635_s0 + $0xe0] sm:$0xf]  ;;  %v1045_v27 = vld [vmem:[%s1635_s0 + $0xe4] sm:$0xf0]  ;;  %v875_v32 = vor.u32 %v1029_v25, %v874_v24 }
  0x23   :  { %v939_v33 = vor.u32 %v1045_v27, %v938_v26 }
  0x31   :  { %422 = vmatmul.bf16.gmra.mxu0 %v835_v36  ;;  %462 = vmatmul.bf16.gmra.mxu2 %v899_v37  ;;  %v882_v36 = vld [vmem:[%s1635_s0 + $0x70] sm:$0xf]  ;;  %v1031_v37 = vld [vmem:[%s1635_s0 + $0x74] sm:$0xf0] }
  0x32   :  { %511 = vmatmul.bf16.gmra.mxu1 %v839_v38  ;;  %551 = vmatmul.bf16.gmra.mxu3 %v903_v39  ;;  %v946_v38 = vld [vmem:[%s1635_s0 + $0xf0] sm:$0xf]  ;;  %v1047_v39 = vld [vmem:[%s1635_s0 + $0xf4] sm:$0xf0]  ;;  %v883_v44 = vor.u32 %v1031_v37, %v882_v36 }
  0x33   :  { %v947_v45 = vor.u32 %v1047_v39, %v946_v38 }
  0x41   :  { %427 = vmatmul.bf16.gmra.mxu0 %v843_v48  ;;  %467 = vmatmul.bf16.gmra.mxu2 %v907_v49 }
  0x42   :  { %516 = vmatmul.bf16.gmra.mxu1 %v847_v50  ;;  %556 = vmatmul.bf16.gmra.mxu3 %v911_v51  ;;  %v654_v51 = vld [vmem:[%s1636_s2] sm:$0xff] }
  0x51   :  { %432 = vmatmul.bf16.gmra.mxu0 %v851_v60  ;;  %472 = vmatmul.bf16.gmra.mxu2 %v915_v61 }
  0x52   :  { %521 = vmatmul.bf16.gmra.mxu1 %v855_v62  ;;  %561 = vmatmul.bf16.gmra.mxu3 %v919_v63 }
  0x61   :  { %437 = vmatmul.bf16.gmra.mxu0 %v859_v8  ;;  %477 = vmatmul.bf16.gmra.mxu2 %v923_v9 }
  0x62   :  { %526 = vmatmul.bf16.gmra.mxu1 %v863_v10  ;;  %566 = vmatmul.bf16.gmra.mxu3 %v927_v11 }
  0x71   :  { %442 = vmatmul.bf16.gmra.mxu0 %v867_v20  ;;  %482 = vmatmul.bf16.gmra.mxu2 %v931_v21 }
  0x72   :  { %531 = vmatmul.bf16.gmra.mxu1 %v871_v22  ;;  %571 = vmatmul.bf16.gmra.mxu3 %v935_v23 }
  0x81   :  { %447 = vmatmul.bf16.gmra.mxu0 %v875_v32  ;;  %487 = vmatmul.bf16.gmra.mxu2 %v939_v33 }
  0x82   :  { %536 = vmatmul.bf16.gmra.mxu1 %v879_v34  ;;  %576 = vmatmul.bf16.gmra.mxu3 %v943_v35 }
  0x91   :  { %452 = vmatmul.bf16.gmra.mxu0 %v883_v44  ;;  %492 = vmatmul.bf16.gmra.mxu2 %v947_v45 }
  0x92   :  { %541 = vmatmul.bf16.gmra.mxu1 %v887_v46  ;;  %581 = vmatmul.bf16.gmra.mxu3 %v951_v47 }
  0x9e   :  { %v418_v48 = vpop.f32.mrf.mxu0 }
  0x9f   :  { %v507_v49 = vpop.f32.mrf.mxu1 }
  0xa0   :  { %v508_v50 = vadd.f32 %v507_v49, %v418_v48 }
  0xa2   :  { %619 = vst [vmem:[%s1637_s3] sm:$0xff] %v508_v50  ;;  %v718_v52 = vmul.f32 0.33333334, %v508_v50 }
  0xa4   :  { %v458_v53 = vpop.f32.mrf.mxu2  ;;  %v750_v55 = vadd.f32 %v718_v52, %v654_v51 }
  0xa5   :  { %v547_v54 = vpop.f32.mrf.mxu3 }
  0xa6   :  { %v548_v56 = vadd.f32 %v547_v54, %v458_v53  ;;  %v420_v57 = vpop.f32.mrf.mxu0  ;;  %782 = vst [vmem:[%s1638_s4] sm:$0xff] %v750_v55 }
  0xa7   :  { %v509_v58 = vpop.f32.mrf.mxu1 }
  0xa8   :  { %v510_v59 = vadd.f32 %v509_v58, %v420_v57  ;;  %635 = vst [vmem:[%s1637_s3 + $0x80] sm:$0xff] %v548_v56  ;;  %v734_v61 = vmul.f32 0.33333334, %v548_v56 }
  0xaa   :  { %620 = vst [vmem:[%s1637_s3 + $0x8] sm:$0xff] %v510_v59  ;;  %v719_v0 = vmul.f32 0.33333334, %v510_v59 }
  0xac   :  { %v460_v1 = vpop.f32.mrf.mxu2 }
  0xad   :  { %v670_v60 = vld [vmem:[%s1636_s2 + $0x80] sm:$0xff]  ;;  %v655_v62 = vld [vmem:[%s1636_s2 + $0x8] sm:$0xff]  ;;  %v549_v2 = vpop.f32.mrf.mxu3 }
  0xae   :  { %v766_v63 = vadd.f32 %v734_v61, %v670_v60  ;;  %v751_v3 = vadd.f32 %v719_v0, %v655_v62  ;;  %v550_v4 = vadd.f32 %v549_v2, %v460_v1  ;;  %v423_v5 = vpop.f32.mrf.mxu0 }
  0xaf   :  { %v512_v6 = vpop.f32.mrf.mxu1 }
  0xb0   :  { %798 = vst [vmem:[%s1638_s4 + $0x80] sm:$0xff] %v766_v63  ;;  %v513_v7 = vadd.f32 %v512_v6, %v423_v5  ;;  %v735_v9 = vmul.f32 0.33333334, %v550_v4 }
  0xb1   :  { %783 = vst [vmem:[%s1638_s4 + $0x8] sm:$0xff] %v751_v3 }
  0xb2   :  { %636 = vst [vmem:[%s1637_s3 + $0x88] sm:$0xff] %v550_v4  ;;  %v720_v12 = vmul.f32 0.33333334, %v513_v7 }
  0xb3   :  { %621 = vst [vmem:[%s1637_s3 + $0x10] sm:$0xff] %v513_v7 }
  0xb4   :  { %v463_v13 = vpop.f32.mrf.mxu2 }
  0xb5   :  { %v552_v14 = vpop.f32.mrf.mxu3 }
  0xb6   :  { %v553_v16 = vadd.f32 %v552_v14, %v463_v13  ;;  %v425_v17 = vpop.f32.mrf.mxu0 }
  0xb7   :  { %v514_v18 = vpop.f32.mrf.mxu1 }
  0xb8   :  { %v671_v8 = vld [vmem:[%s1636_s2 + $0x88] sm:$0xff]  ;;  %v656_v10 = vld [vmem:[%s1636_s2 + $0x10] sm:$0xff]  ;;  %v515_v19 = vadd.f32 %v514_v18, %v425_v17  ;;  %637 = vst [vmem:[%s1637_s3 + $0x90] sm:$0xff] %v553_v16  ;;  %v736_v21 = vmul.f32 0.33333334, %v553_v16 }
  0xb9   :  { %v767_v11 = vadd.f32 %v735_v9, %v671_v8  ;;  %v752_v15 = vadd.f32 %v720_v12, %v656_v10 }
  0xba   :  { %622 = vst [vmem:[%s1637_s3 + $0x18] sm:$0xff] %v515_v19  ;;  %v721_v24 = vmul.f32 0.33333334, %v515_v19 }
  0xbb   :  { %799 = vst [vmem:[%s1638_s4 + $0x88] sm:$0xff] %v767_v11 }
  0xbc   :  { %784 = vst [vmem:[%s1638_s4 + $0x10] sm:$0xff] %v752_v15  ;;  %v465_v25 = vpop.f32.mrf.mxu2 }
  0xbd   :  { %v554_v26 = vpop.f32.mrf.mxu3 }
  0xbe   :  { %v555_v28 = vadd.f32 %v554_v26, %v465_v25  ;;  %v428_v29 = vpop.f32.mrf.mxu0 }
  0xbf   :  { %v517_v30 = vpop.f32.mrf.mxu1 }
  0xc0   :  { %v518_v31 = vadd.f32 %v517_v30, %v428_v29  ;;  %638 = vst [vmem:[%s1637_s3 + $0x98] sm:$0xff] %v555_v28  ;;  %v737_v33 = vmul.f32 0.33333334, %v555_v28 }
  0xc2   :  { %623 = vst [vmem:[%s1637_s3 + $0x20] sm:$0xff] %v518_v31  ;;  %v722_v36 = vmul.f32 0.33333334, %v518_v31 }
  0xc3   :  { %v672_v20 = vld [vmem:[%s1636_s2 + $0x90] sm:$0xff]  ;;  %v657_v22 = vld [vmem:[%s1636_s2 + $0x18] sm:$0xff] }
  0xc4   :  { %v768_v23 = vadd.f32 %v736_v21, %v672_v20  ;;  %v753_v27 = vadd.f32 %v721_v24, %v657_v22  ;;  %v468_v37 = vpop.f32.mrf.mxu2 }
  0xc5   :  { %v557_v38 = vpop.f32.mrf.mxu3 }
  0xc6   :  { %800 = vst [vmem:[%s1638_s4 + $0x90] sm:$0xff] %v768_v23  ;;  %v558_v40 = vadd.f32 %v557_v38, %v468_v37  ;;  %v430_v41 = vpop.f32.mrf.mxu0 }
  0xc7   :  { %785 = vst [vmem:[%s1638_s4 + $0x18] sm:$0xff] %v753_v27  ;;  %v519_v42 = vpop.f32.mrf.mxu1 }
  0xc8   :  { %v520_v43 = vadd.f32 %v519_v42, %v430_v41  ;;  %639 = vst [vmem:[%s1637_s3 + $0xa0] sm:$0xff] %v558_v40  ;;  %v738_v45 = vmul.f32 0.33333334, %v558_v40 }
  0xca   :  { %624 = vst [vmem:[%s1637_s3 + $0x28] sm:$0xff] %v520_v43  ;;  %v723_v48 = vmul.f32 0.33333334, %v520_v43 }
  0xcc   :  { %v470_v49 = vpop.f32.mrf.mxu2 }
  0xcd   :  { %v559_v50 = vpop.f32.mrf.mxu3 }
  0xce   :  { %v673_v32 = vld [vmem:[%s1636_s2 + $0x98] sm:$0xff]  ;;  %v658_v34 = vld [vmem:[%s1636_s2 + $0x20] sm:$0xff]  ;;  %v560_v52 = vadd.f32 %v559_v50, %v470_v49  ;;  %v433_v53 = vpop.f32.mrf.mxu0 }
  0xcf   :  { %v769_v35 = vadd.f32 %v737_v33, %v673_v32  ;;  %v754_v39 = vadd.f32 %v722_v36, %v658_v34  ;;  %v522_v54 = vpop.f32.mrf.mxu1 }
  0xd0   :  { %v523_v55 = vadd.f32 %v522_v54, %v433_v53  ;;  %640 = vst [vmem:[%s1637_s3 + $0xa8] sm:$0xff] %v560_v52  ;;  %v739_v57 = vmul.f32 0.33333334, %v560_v52 }
  0xd1   :  { %801 = vst [vmem:[%s1638_s4 + $0x98] sm:$0xff] %v769_v35 }
  0xd2   :  { %786 = vst [vmem:[%s1638_s4 + $0x20] sm:$0xff] %v754_v39  ;;  %v724_v60 = vmul.f32 0.33333334, %v523_v55 }
  0xd3   :  { %625 = vst [vmem:[%s1637_s3 + $0x30] sm:$0xff] %v523_v55 }
  0xd4   :  { %v473_v61 = vpop.f32.mrf.mxu2 }
  0xd5   :  { %v562_v62 = vpop.f32.mrf.mxu3 }
  0xd6   :  { %v563_v0 = vadd.f32 %v562_v62, %v473_v61  ;;  %v435_v1 = vpop.f32.mrf.mxu0 }
  0xd7   :  { %v524_v2 = vpop.f32.mrf.mxu1 }
  0xd8   :  { %v525_v3 = vadd.f32 %v524_v2, %v435_v1  ;;  %641 = vst [vmem:[%s1637_s3 + $0xb0] sm:$0xff] %v563_v0  ;;  %v740_v5 = vmul.f32 0.33333334, %v563_v0 }
  0xd9   :  { %v674_v44 = vld [vmem:[%s1636_s2 + $0xa0] sm:$0xff]  ;;  %v659_v46 = vld [vmem:[%s1636_s2 + $0x28] sm:$0xff] }
  0xda   :  { %v770_v47 = vadd.f32 %v738_v45, %v674_v44  ;;  %v755_v51 = vadd.f32 %v723_v48, %v659_v46  ;;  %626 = vst [vmem:[%s1637_s3 + $0x38] sm:$0xff] %v525_v3  ;;  %v725_v8 = vmul.f32 0.33333334, %v525_v3 }
  0xdc   :  { %802 = vst [vmem:[%s1638_s4 + $0xa0] sm:$0xff] %v770_v47  ;;  %v475_v9 = vpop.f32.mrf.mxu2 }
  0xdd   :  { %787 = vst [vmem:[%s1638_s4 + $0x28] sm:$0xff] %v755_v51  ;;  %v564_v10 = vpop.f32.mrf.mxu3 }
  0xde   :  { %v565_v12 = vadd.f32 %v564_v10, %v475_v9  ;;  %v438_v13 = vpop.f32.mrf.mxu0 }
  0xdf   :  { %v527_v14 = vpop.f32.mrf.mxu1 }
  0xe0   :  { %v528_v15 = vadd.f32 %v527_v14, %v438_v13  ;;  %642 = vst [vmem:[%s1637_s3 + $0xb8] sm:$0xff] %v565_v12  ;;  %v741_v17 = vmul.f32 0.33333334, %v565_v12 }
  0xe2   :  { %627 = vst [vmem:[%s1637_s3 + $0x40] sm:$0xff] %v528_v15  ;;  %v726_v20 = vmul.f32 0.33333334, %v528_v15 }
  0xe4   :  { %v675_v56 = vld [vmem:[%s1636_s2 + $0xa8] sm:$0xff]  ;;  %v660_v58 = vld [vmem:[%s1636_s2 + $0x30] sm:$0xff]  ;;  %v478_v21 = vpop.f32.mrf.mxu2 }
  0xe5   :  { %v771_v59 = vadd.f32 %v739_v57, %v675_v56  ;;  %v756_v63 = vadd.f32 %v724_v60, %v660_v58  ;;  %v567_v22 = vpop.f32.mrf.mxu3 }
  0xe6   :  { %v568_v24 = vadd.f32 %v567_v22, %v478_v21  ;;  %v440_v25 = vpop.f32.mrf.mxu0 }
  0xe7   :  { %803 = vst [vmem:[%s1638_s4 + $0xa8] sm:$0xff] %v771_v59  ;;  %v529_v26 = vpop.f32.mrf.mxu1 }
  0xe8   :  { %788 = vst [vmem:[%s1638_s4 + $0x30] sm:$0xff] %v756_v63  ;;  %v530_v27 = vadd.f32 %v529_v26, %v440_v25  ;;  %v742_v29 = vmul.f32 0.33333334, %v568_v24 }
  0xe9   :  { %643 = vst [vmem:[%s1637_s3 + $0xc0] sm:$0xff] %v568_v24 }
  0xea   :  { %628 = vst [vmem:[%s1637_s3 + $0x48] sm:$0xff] %v530_v27  ;;  %v727_v32 = vmul.f32 0.33333334, %v530_v27 }
  0xec   :  { %v480_v33 = vpop.f32.mrf.mxu2 }
  0xed   :  { %v569_v34 = vpop.f32.mrf.mxu3 }
  0xee   :  { %v570_v36 = vadd.f32 %v569_v34, %v480_v33  ;;  %v443_v37 = vpop.f32.mrf.mxu0 }
  0xef   :  { %v676_v4 = vld [vmem:[%s1636_s2 + $0xb0] sm:$0xff]  ;;  %v661_v6 = vld [vmem:[%s1636_s2 + $0x38] sm:$0xff]  ;;  %v532_v38 = vpop.f32.mrf.mxu1 }
  0xf0   :  { %v772_v7 = vadd.f32 %v740_v5, %v676_v4  ;;  %v757_v11 = vadd.f32 %v725_v8, %v661_v6  ;;  %v533_v39 = vadd.f32 %v532_v38, %v443_v37  ;;  %644 = vst [vmem:[%s1637_s3 + $0xc8] sm:$0xff] %v570_v36  ;;  %v743_v41 = vmul.f32 0.33333334, %v570_v36 }
  0xf2   :  { %804 = vst [vmem:[%s1638_s4 + $0xb0] sm:$0xff] %v772_v7  ;;  %v728_v44 = vmul.f32 0.33333334, %v533_v39 }
  0xf3   :  { %789 = vst [vmem:[%s1638_s4 + $0x38] sm:$0xff] %v757_v11 }
  0xf4   :  { %629 = vst [vmem:[%s1637_s3 + $0x50] sm:$0xff] %v533_v39  ;;  %v483_v45 = vpop.f32.mrf.mxu2 }
  0xf5   :  { %v572_v46 = vpop.f32.mrf.mxu3 }
  0xf6   :  { %v573_v48 = vadd.f32 %v572_v46, %v483_v45  ;;  %v445_v49 = vpop.f32.mrf.mxu0 }
  0xf7   :  { %v534_v50 = vpop.f32.mrf.mxu1 }
  0xf8   :  { %v535_v51 = vadd.f32 %v534_v50, %v445_v49  ;;  %645 = vst [vmem:[%s1637_s3 + $0xd0] sm:$0xff] %v573_v48  ;;  %v744_v53 = vmul.f32 0.33333334, %v573_v48 }
  0xfa   :  { %v677_v16 = vld [vmem:[%s1636_s2 + $0xb8] sm:$0xff]  ;;  %v662_v18 = vld [vmem:[%s1636_s2 + $0x40] sm:$0xff]  ;;  %630 = vst [vmem:[%s1637_s3 + $0x58] sm:$0xff] %v535_v51  ;;  %v729_v56 = vmul.f32 0.33333334, %v535_v51 }
  0xfb   :  { %v773_v19 = vadd.f32 %v741_v17, %v677_v16  ;;  %v758_v23 = vadd.f32 %v726_v20, %v662_v18 }
  0xfc   :  { %v485_v57 = vpop.f32.mrf.mxu2 }
  0xfd   :  { %805 = vst [vmem:[%s1638_s4 + $0xb8] sm:$0xff] %v773_v19  ;;  %v574_v58 = vpop.f32.mrf.mxu3 }
  0xfe   :  { %790 = vst [vmem:[%s1638_s4 + $0x40] sm:$0xff] %v758_v23  ;;  %v575_v60 = vadd.f32 %v574_v58, %v485_v57  ;;  %v448_v61 = vpop.f32.mrf.mxu0 }
  0xff   :  { %v537_v62 = vpop.f32.mrf.mxu1 }
 0x100   :  { %v538_v63 = vadd.f32 %v537_v62, %v448_v61  ;;  %646 = vst [vmem:[%s1637_s3 + $0xd8] sm:$0xff] %v575_v60  ;;  %v745_v1 = vmul.f32 0.33333334, %v575_v60 }
 0x102   :  { %631 = vst [vmem:[%s1637_s3 + $0x60] sm:$0xff] %v538_v63  ;;  %v730_v4 = vmul.f32 0.33333334, %v538_v63 }
 0x104   :  { %v488_v5 = vpop.f32.mrf.mxu2 }
 0x105   :  { %v678_v28 = vld [vmem:[%s1636_s2 + $0xc0] sm:$0xff]  ;;  %v663_v30 = vld [vmem:[%s1636_s2 + $0x48] sm:$0xff]  ;;  %v577_v6 = vpop.f32.mrf.mxu3 }
 0x106   :  { %v774_v31 = vadd.f32 %v742_v29, %v678_v28  ;;  %v759_v35 = vadd.f32 %v727_v32, %v663_v30  ;;  %v578_v8 = vadd.f32 %v577_v6, %v488_v5  ;;  %v450_v9 = vpop.f32.mrf.mxu0 }
 0x107   :  { %v539_v10 = vpop.f32.mrf.mxu1 }
 0x108   :  { %806 = vst [vmem:[%s1638_s4 + $0xc0] sm:$0xff] %v774_v31  ;;  %v540_v11 = vadd.f32 %v539_v10, %v450_v9  ;;  %v746_v13 = vmul.f32 0.33333334, %v578_v8 }
 0x109   :  { %791 = vst [vmem:[%s1638_s4 + $0x48] sm:$0xff] %v759_v35 }
 0x10a   :  { %647 = vst [vmem:[%s1637_s3 + $0xe0] sm:$0xff] %v578_v8  ;;  %v731_v16 = vmul.f32 0.33333334, %v540_v11 }
 0x10b   :  { %632 = vst [vmem:[%s1637_s3 + $0x68] sm:$0xff] %v540_v11 }
 0x10c   :  { %v490_v17 = vpop.f32.mrf.mxu2 }
 0x10d   :  { %v579_v18 = vpop.f32.mrf.mxu3 }
 0x10e   :  { %v580_v20 = vadd.f32 %v579_v18, %v490_v17  ;;  %v453_v21 = vpop.f32.mrf.mxu0 }
 0x10f   :  { %v542_v22 = vpop.f32.mrf.mxu1 }
 0x110   :  { %v679_v40 = vld [vmem:[%s1636_s2 + $0xc8] sm:$0xff]  ;;  %v664_v42 = vld [vmem:[%s1636_s2 + $0x50] sm:$0xff]  ;;  %v543_v23 = vadd.f32 %v542_v22, %v453_v21  ;;  %648 = vst [vmem:[%s1637_s3 + $0xe8] sm:$0xff] %v580_v20  ;;  %v747_v25 = vmul.f32 0.33333334, %v580_v20 }
 0x111   :  { %v775_v43 = vadd.f32 %v743_v41, %v679_v40  ;;  %v760_v47 = vadd.f32 %v728_v44, %v664_v42 }
 0x112   :  { %633 = vst [vmem:[%s1637_s3 + $0x70] sm:$0xff] %v543_v23  ;;  %v732_v28 = vmul.f32 0.33333334, %v543_v23 }
 0x113   :  { %807 = vst [vmem:[%s1638_s4 + $0xc8] sm:$0xff] %v775_v43 }
 0x114   :  { %792 = vst [vmem:[%s1638_s4 + $0x50] sm:$0xff] %v760_v47  ;;  %v493_v29 = vpop.f32.mrf.mxu2 }
 0x115   :  { %v582_v30 = vpop.f32.mrf.mxu3 }
 0x116   :  { %v583_v32 = vadd.f32 %v582_v30, %v493_v29  ;;  %v455_v33 = vpop.f32.mrf.mxu0 }
 0x117   :  { %v544_v34 = vpop.f32.mrf.mxu1 }
 0x118   :  { %v545_v35 = vadd.f32 %v544_v34, %v455_v33  ;;  %649 = vst [vmem:[%s1637_s3 + $0xf0] sm:$0xff] %v583_v32  ;;  %v748_v37 = vmul.f32 0.33333334, %v583_v32 }
 0x11a   :  { %634 = vst [vmem:[%s1637_s3 + $0x78] sm:$0xff] %v545_v35  ;;  %v733_v40 = vmul.f32 0.33333334, %v545_v35 }
 0x11b   :  { %v680_v52 = vld [vmem:[%s1636_s2 + $0xd0] sm:$0xff]  ;;  %v665_v54 = vld [vmem:[%s1636_s2 + $0x58] sm:$0xff] }
 0x11c   :  { %v776_v55 = vadd.f32 %v744_v53, %v680_v52  ;;  %v761_v59 = vadd.f32 %v729_v56, %v665_v54  ;;  %v495_v41 = vpop.f32.mrf.mxu2 }
 0x11d   :  { %v584_v42 = vpop.f32.mrf.mxu3 }
 0x11e   :  { %808 = vst [vmem:[%s1638_s4 + $0xd0] sm:$0xff] %v776_v55  ;;  %v585_v44 = vadd.f32 %v584_v42, %v495_v41 }
 0x11f   :  { %793 = vst [vmem:[%s1638_s4 + $0x58] sm:$0xff] %v761_v59 }
 0x120   :  { %650 = vst [vmem:[%s1637_s3 + $0xf8] sm:$0xff] %v585_v44  ;;  %v749_v46 = vmul.f32 0.33333334, %v585_v44 }
 0x126   :  { %v681_v0 = vld [vmem:[%s1636_s2 + $0xd8] sm:$0xff]  ;;  %v666_v2 = vld [vmem:[%s1636_s2 + $0x60] sm:$0xff] }
 0x127   :  { %v777_v3 = vadd.f32 %v745_v1, %v681_v0  ;;  %v762_v7 = vadd.f32 %v730_v4, %v666_v2 }
 0x129   :  { %809 = vst [vmem:[%s1638_s4 + $0xd8] sm:$0xff] %v777_v3 }
 0x12a   :  { %794 = vst [vmem:[%s1638_s4 + $0x60] sm:$0xff] %v762_v7 }
 0x131   :  { %v682_v12 = vld [vmem:[%s1636_s2 + $0xe0] sm:$0xff]  ;;  %v667_v14 = vld [vmem:[%s1636_s2 + $0x68] sm:$0xff] }
 0x132   :  { %v778_v15 = vadd.f32 %v746_v13, %v682_v12  ;;  %v763_v19 = vadd.f32 %v731_v16, %v667_v14 }
 0x134   :  { %810 = vst [vmem:[%s1638_s4 + $0xe0] sm:$0xff] %v778_v15 }
 0x135   :  { %795 = vst [vmem:[%s1638_s4 + $0x68] sm:$0xff] %v763_v19 }
 0x13c   :  { %v683_v24 = vld [vmem:[%s1636_s2 + $0xe8] sm:$0xff]  ;;  %v668_v26 = vld [vmem:[%s1636_s2 + $0x70] sm:$0xff] }
 0x13d   :  { %v779_v27 = vadd.f32 %v747_v25, %v683_v24  ;;  %v764_v31 = vadd.f32 %v732_v28, %v668_v26 }
 0x13f   :  { %811 = vst [vmem:[%s1638_s4 + $0xe8] sm:$0xff] %v779_v27 }
 0x140   :  { %796 = vst [vmem:[%s1638_s4 + $0x70] sm:$0xff] %v764_v31 }
 0x147   :  { %v684_v36 = vld [vmem:[%s1636_s2 + $0xf0] sm:$0xff]  ;;  %v669_v38 = vld [vmem:[%s1636_s2 + $0x78] sm:$0xff] }
 0x148   :  { %v780_v39 = vadd.f32 %v748_v37, %v684_v36  ;;  %v765_v43 = vadd.f32 %v733_v40, %v669_v38 }
 0x14a   :  { %812 = vst [vmem:[%s1638_s4 + $0xf0] sm:$0xff] %v780_v39 }
 0x14b   :  { %797 = vst [vmem:[%s1638_s4 + $0x78] sm:$0xff] %v765_v43 }
 0x152   :  { %v685_v45 = vld [vmem:[%s1636_s2 + $0xf8] sm:$0xff] }
 0x153   :  { %v781_v47 = vadd.f32 %v749_v46, %v685_v45 }
 0x155   :  { %813 = vst [vmem:[%s1638_s4 + $0xf8] sm:$0xff] %v781_v47 }

</bundles_post_ra>
